<compile_context>
chip_gen: v7x
topology: tpu7x:2x2x1
jax: 0.10.0
libtpu: 0.0.40
codegen_flags: <defaults>
</compile_context>

<pallas_src>
import functools

import jax
import jax.numpy as jnp
from jax.experimental import pallas as pl
from jax.experimental.pallas import tpu as pltpu

LANE = 128
_BN_EPS = 1e-5


def _round_up(x, m):
    return (x + m - 1) // m * m


def _pick_row_tile(H, W, max_rows):
    """Largest TH dividing H with TH*W <= max_rows and TH*W a multiple of 8."""
    best = None
    for th in range(1, H + 1):
        if H % th == 0 and (th * W) % 8 == 0 and th * W <= max_rows:
            best = th
    return best if best is not None else H


# --------------------------------------------------------------------------- #
# Conv3x3(pad=1) + bias, emitting raw output + per-channel (sum, sumsq) stats. #
# --------------------------------------------------------------------------- #
def _conv_stats_kernel(x_ref, w_ref, b_ref, sin_ref, shf_ref,
                       y_ref, stats_ref, xpad_ref,
                       *, H, W, TH, apply_input_act, fuse_k):
    """
    x_ref    : (1, H*W, Cin)   full image (flattened spatial), pre-activation
    w_ref    : (9*Cin, Cp)     conv taps, (ky,kx)-major, channel-minor rows
    b_ref    : (1, Cp)         conv bias
    sin_ref  : (1, Cin)        folded-BN scale of previous block (if apply_input_act)
    shf_ref  : (1, Cin)        folded-BN shift of previous block (if apply_input_act)
    y_ref    : (1, TH*W, Cp)   raw conv output tile (pre-BN)
    stats_ref: (1, 2, Cp)      per-image accumulated [sum ; sum of squares]
    xpad_ref : (H+2, W+2, Cin) zero-padded (activated) image, VMEM scratch
    """
    ht = pl.program_id(1)
    Cin = x_ref.shape[-1]
    Cp = y_ref.shape[-1]

    # Per-image init + staging.  Every batch index initialises its own stats
    # block and its own padded scratch so the batch axis is safe to shard
    # across TensorCores ("parallel" dimension semantics).
    @pl.when(ht == 0)
    def _stage_image():
        stats_ref[...] = jnp.zeros(stats_ref.shape, stats_ref.dtype)
        xpad_ref[...] = jnp.zeros(xpad_ref.shape, xpad_ref.dtype)
        x = x_ref[0].reshape(H, W, Cin)
        if apply_input_act:
            # Previous block's folded BN + ReLU, applied once per image while
            # staging (hidden under the input DMA / MXU of later tiles).
            x = jnp.maximum(x * sin_ref[...] + shf_ref[...], 0.0)
        xpad_ref[1:H + 1, 1:W + 1, :] = x

    r0 = pl.multiple_of(ht * TH, TH)  # first output row of this tile

    acc = jnp.zeros((TH * W, Cp), jnp.float32)
    if fuse_k:
        # Lane-aligned channels: one matmul per ky-band with K = 3*Cin.
        for ky in range(3):
            taps = [xpad_ref[pl.ds(r0 + ky, TH), kx:kx + W, :] for kx in range(3)]
            band = jnp.concatenate(taps, axis=-1).reshape(TH * W, 3 * Cin)
            acc = acc + jnp.dot(band, w_ref[ky * 3 * Cin:(ky + 1) * 3 * Cin, :],
                                preferred_element_type=jnp.float32)
    else:
        # Tiny Cin (first conv): 9 accumulating dots.
        for ky in range(3):
            for kx in range(3):
                t = ky * 3 + kx
                tap = xpad_ref[pl.ds(r0 + ky, TH), kx:kx + W, :].reshape(TH * W, Cin)
                acc = acc + jnp.dot(tap, w_ref[t * Cin:(t + 1) * Cin, :],
                                    preferred_element_type=jnp.float32)

    acc = acc + b_ref[...]

    # Per-image BatchNorm statistics (reduced over H, W here; over N on host).
    stats_ref[0, 0:1, :] = stats_ref[0, 0:1, :] + jnp.sum(acc, axis=0, keepdims=True)
    stats_ref[0, 1:2, :] = stats_ref[0, 1:2, :] + jnp.sum(acc * acc, axis=0,
                                                          keepdims=True)

    y_ref[0] = acc


def _conv_bn_stats(x, w_flat, b, scale_in, shift_in, *, H, W, TH, apply_input_act):
    """x: (N, H*W, Cin) f32 -> (y_raw (N, H*W, Cp) f32, stats (N, 2, Cp) f32)."""
    N, HW, Cin = x.shape
    Cp = w_flat.shape[-1]
    n_ht = H // TH
    fuse_k = (Cin % LANE == 0)

    kernel = functools.partial(_conv_stats_kernel, H=H, W=W, TH=TH,
                               apply_input_act=apply_input_act, fuse_k=fuse_k)

    y_raw, stats = pl.pallas_call(
        kernel,
        grid=(N, n_ht),
        in_specs=[
            pl.BlockSpec((1, HW, Cin), lambda n, ht: (n, 0, 0)),     # full image per n
            pl.BlockSpec((9 * Cin, Cp), lambda n, ht: (0, 0)),       # weights
            pl.BlockSpec((1, Cp), lambda n, ht: (0, 0)),             # bias
            pl.BlockSpec((1, Cin), lambda n, ht: (0, 0)),            # input scale
            pl.BlockSpec((1, Cin), lambda n, ht: (0, 0)),            # input shift
        ],
        out_specs=(
            pl.BlockSpec((1, TH * W, Cp), lambda n, ht: (n, ht, 0)),  # raw conv out
            pl.BlockSpec((1, 2, Cp), lambda n, ht: (n, 0, 0)),        # per-image stats
        ),
        out_shape=(
            jax.ShapeDtypeStruct((N, HW, Cp), jnp.float32),
            jax.ShapeDtypeStruct((N, 2, Cp), jnp.float32),
        ),
        scratch_shapes=[pltpu.VMEM((H + 2, W + 2, Cin), jnp.float32)],
        compiler_params=pltpu.CompilerParams(
            dimension_semantics=("parallel", "arbitrary")),
    )(x, w_flat, b, scale_in, shift_in)
    return y_raw, stats


# --------------------------------------------------------------------------- #
# Elementwise folded-BN + ReLU (for the final block's output).                 #
# --------------------------------------------------------------------------- #
def _bn_relu_kernel(x_ref, scale_ref, shift_ref, o_ref):
    o_ref[...] = jnp.maximum(x_ref[...] * scale_ref[...] + shift_ref[...], 0.0)


def _bn_relu_apply(x, scale, shift, *, H, W, TH):
    N, HW, Cp = x.shape
    n_ht = H // TH
    return pl.pallas_call(
        _bn_relu_kernel,
        grid=(N, n_ht),
        in_specs=[
            pl.BlockSpec((1, TH * W, Cp), lambda n, ht: (n, ht, 0)),
            pl.BlockSpec((1, Cp), lambda n, ht: (0, 0)),
            pl.BlockSpec((1, Cp), lambda n, ht: (0, 0)),
        ],
        out_specs=pl.BlockSpec((1, TH * W, Cp), lambda n, ht: (n, ht, 0)),
        out_shape=jax.ShapeDtypeStruct((N, HW, Cp), jnp.float32),
        compiler_params=pltpu.CompilerParams(
            dimension_semantics=("parallel", "parallel")),
    )(x, scale, shift)


# --------------------------------------------------------------------------- #
# DoubleConv forward.                                                          #
# --------------------------------------------------------------------------- #
def double_conv(x_nchw, params, *, row_tile=2048):
    """(Conv2d 3x3 pad=1 -> BatchNorm2d(batch stats) -> ReLU) x 2.

    x_nchw: (N, C_in, H, W) f32.  params: two (w (9,cin,cout), b, gamma, beta).
    Returns (N, C_out, H, W) f32.
    """
    N, _, H, W = x_nchw.shape
    x = jnp.transpose(x_nchw, (0, 2, 3, 1)).astype(jnp.float32)   # NHWC
    cur_c = x.shape[-1]
    x = x.reshape(N, H * W, cur_c)

    TH = _pick_row_tile(H, W, row_tile)
    count = float(N * H * W)

    scale_in = jnp.ones((1, cur_c), jnp.float32)
    shift_in = jnp.zeros((1, cur_c), jnp.float32)
    apply_act = False
    cout_final = None

    for (w9, b, gamma, beta) in params:
        cin, cout = w9.shape[1], w9.shape[2]
        cout_final = cout
        Cp = _round_up(cout, LANE)                      # lane-dense output channels
        # Pad weights/bias/affine to the lane-dense layout (extra rows see zero
        # inputs; extra columns produce exact zeros end-to-end).
        w_pad = jnp.zeros((9, cur_c, Cp), jnp.float32).at[:, :cin, :cout].set(w9)
        w_flat = w_pad.reshape(9 * cur_c, Cp)
        b_pad = jnp.zeros((1, Cp), jnp.float32).at[0, :cout].set(b)
        gamma_pad = jnp.zeros((Cp,), jnp.float32).at[:cout].set(gamma)
        beta_pad = jnp.zeros((Cp,), jnp.float32).at[:cout].set(beta)

        y_raw, stats_n = _conv_bn_stats(x, w_flat, b_pad, scale_in, shift_in,
                                        H=H, W=W, TH=TH, apply_input_act=apply_act)

        # Finalize global BatchNorm (training-mode batch stats, biased variance)
        # and fold into a per-channel scale/shift on tiny (Cp,) vectors.
        stats = jnp.sum(stats_n, axis=0)                # (2, Cp): sum over batch
        mean = stats[0] / count
        var = jnp.maximum(stats[1] / count - mean * mean, 0.0)
        scale = gamma_pad * jax.lax.rsqrt(var + _BN_EPS)
        shift = beta_pad - mean * scale

        # BN+ReLU of this block is applied lazily: fused into the next conv's
        # input staging, or by the final elementwise kernel below.
        x = y_raw
        scale_in = scale.reshape(1, Cp)
        shift_in = shift.reshape(1, Cp)
        cur_c = Cp
        apply_act = True

    y = _bn_relu_apply(x, scale_in, shift_in, H=H, W=W, TH=TH)    # (N, H*W, Cp)
    y = y.reshape(N, H, W, cur_c)[:, :, :, :cout_final]
    return jnp.transpose(y, (0, 3, 1, 2))                          # NHWC -> NCHW


# --------------------------------------------------------------------------- #
# Pure-JAX reference and test harness.                                         #
# --------------------------------------------------------------------------- #
def reference_double_conv(x_nchw, params):
    x = jnp.transpose(x_nchw, (0, 2, 3, 1))
    for (w9, b, gamma, beta) in params:
        cin, cout = w9.shape[1], w9.shape[2]
        w_hwio = w9.reshape(3, 3, cin, cout)
        y = jax.lax.conv_general_dilated(
            x, w_hwio, window_strides=(1, 1), padding="SAME",
            dimension_numbers=("NHWC", "HWIO", "NHWC"),
            precision=jax.lax.Precision.HIGHEST,
        ) + b
        mean = jnp.mean(y, axis=(0, 1, 2), keepdims=True)
        var = jnp.mean(jnp.square(y - mean), axis=(0, 1, 2), keepdims=True)
        y = (y - mean) * jax.lax.rsqrt(var + _BN_EPS) * gamma + beta
        x = jnp.maximum(y, 0.0)
    return jnp.transpose(x, (0, 3, 1, 2))


def make_params(key, in_channels, out_channels):
    """Deterministic synthetic parameters (same shapes as the PyTorch module)."""
    params = []
    cin = in_channels
    for _ in range(2):
        key, kw, kb, kg, kbt = jax.random.split(key, 5)
        w_hwio = jax.random.normal(kw, (3, 3, cin, out_channels), jnp.float32) * 0.1
        b = jax.random.normal(kb, (out_channels,), jnp.float32) * 0.01
        gamma = 1.0 + 0.1 * jax.random.normal(kg, (out_channels,), jnp.float32)
        beta = 0.1 * jax.random.normal(kbt, (out_channels,), jnp.float32)
        params.append((w_hwio.reshape(9, cin, out_channels), b, gamma, beta))
        cin = out_channels
    return params


if __name__ == "__main__":
    key = jax.random.PRNGKey(0)
    kx, kp = jax.random.split(key)

    N, C_in, C_out, H, W = 2, 4, 8, 16, 16
    x = jax.random.normal(kx, (N, C_in, H, W), jnp.float32)
    params = make_params(kp, C_in, C_out)

    # row_tile=128 forces 2 row-tiles per image so the multi-tile / stats-
    # accumulation path is exercised even at this toy spatial size.
    out = double_conv(x, params, row_tile=128)
    out = jax.block_until_ready(out)

    ref = reference_double_conv(x, params)
    assert out.shape == (N, C_out, H, W)
    assert jnp.allclose(out, ref, rtol=2e-3, atol=2e-3), "mismatch vs JAX reference"

    print("KERNEL_OK")
</pallas_src>

<mosaic_0001>
module attributes {stable_mosaic.version = 11 : i64} {
  func.func @_conv_stats_kernel(%arg0: i32, %arg1: i32, %arg2: memref<1x256x4xf32, #tpu.memory_space<vmem>>, %arg3: memref<36x128xf32, #tpu.memory_space<vmem>>, %arg4: memref<1x128xf32, #tpu.memory_space<vmem>>, %arg5: memref<1x4xf32, #tpu.memory_space<vmem>>, %arg6: memref<1x4xf32, #tpu.memory_space<vmem>>, %arg7: memref<1x128x128xf32, #tpu.memory_space<vmem>>, %arg8: memref<1x2x128xf32, #tpu.memory_space<vmem>>, %arg9: memref<18x18x4xf32, #tpu.memory_space<vmem>>) attributes {dimension_semantics = [#tpu.dimension_semantics<parallel>, #tpu.dimension_semantics<arbitrary>], iteration_bounds = array<i64: 2, 2>, scalar_prefetch = 0 : i64, scratch_operands = 1 : i64, tpu.core_type = #tpu.core_type<tc>, window_params = [{transform_indices = @transform_0, window_bounds = array<i64: 1, 256, 4>}, {pipeline_mode = #tpu.pipeline_mode<synchronous>, transform_indices = @transform_1, window_bounds = array<i64: 36, 128>}, {pipeline_mode = #tpu.pipeline_mode<synchronous>, transform_indices = @transform_2, window_bounds = array<i64: 1, 128>}, {pipeline_mode = #tpu.pipeline_mode<synchronous>, transform_indices = @transform_3, window_bounds = array<i64: 1, 4>}, {pipeline_mode = #tpu.pipeline_mode<synchronous>, transform_indices = @transform_4, window_bounds = array<i64: 1, 4>}, {transform_indices = @transform_5, window_bounds = array<i64: 1, 128, 128>}, {transform_indices = @transform_6, window_bounds = array<i64: 1, 2, 128>}]} {
    %c0_i32 = arith.constant 0 : i32
    %0 = arith.cmpi eq, %arg1, %c0_i32 : i32
    %1 = arith.extui %0 : i1 to i32
    %c0_i32_0 = arith.constant 0 : i32
    %2 = arith.cmpi ne, %1, %c0_i32_0 : i32
    scf.if %2 {
      %cst_61 = arith.constant 0.000000e+00 : f32
      %92 = vector.broadcast %cst_61 : f32 to vector<1x2x128xf32>
      %c0_62 = arith.constant 0 : index
      %c0_63 = arith.constant 0 : index
      %c0_64 = arith.constant 0 : index
      %93 = vector.load %arg8[%c0_62, %c0_63, %c0_64] : memref<1x2x128xf32, #tpu.memory_space<vmem>>, vector<1x2x128xf32>
      tpu.vector_store %arg8[%c0_62, %c0_63, %c0_64], %92 {strides = array<i32>} : memref<1x2x128xf32, #tpu.memory_space<vmem>>, vector<1x2x128xf32>,
      %cst_65 = arith.constant 0.000000e+00 : f32
      %94 = vector.broadcast %cst_65 : f32 to vector<18x18x4xf32>
      %c0_66 = arith.constant 0 : index
      %c0_67 = arith.constant 0 : index
      %c0_68 = arith.constant 0 : index
      %95 = vector.load %arg9[%c0_66, %c0_67, %c0_68] : memref<18x18x4xf32, #tpu.memory_space<vmem>>, vector<18x18x4xf32>
      tpu.vector_store %arg9[%c0_66, %c0_67, %c0_68], %94 {strides = array<i32>} : memref<18x18x4xf32, #tpu.memory_space<vmem>>, vector<18x18x4xf32>,
      %c0_69 = arith.constant 0 : index
      %c0_70 = arith.constant 0 : index
      %c0_71 = arith.constant 0 : index
      %96 = vector.load %arg2[%c0_69, %c0_70, %c0_71] : memref<1x256x4xf32, #tpu.memory_space<vmem>>, vector<1x256x4xf32>
      %97 = vector.shape_cast %96 : vector<1x256x4xf32> to vector<256x4xf32>
      %98 = vector.shape_cast %97 : vector<256x4xf32> to vector<16x16x4xf32>
      %c1_72 = arith.constant 1 : index
      %c1_73 = arith.constant 1 : index
      %c0_74 = arith.constant 0 : index
      %99 = vector.load %arg9[%c1_72, %c1_73, %c0_74] : memref<18x18x4xf32, #tpu.memory_space<vmem>>, vector<16x16x4xf32>
      tpu.vector_store %arg9[%c1_72, %c1_73, %c0_74], %98 {strides = array<i32>} : memref<18x18x4xf32, #tpu.memory_space<vmem>>, vector<16x16x4xf32>,
    } else {
    }
    %c8_i32 = arith.constant 8 : i32
    %3 = arith.muli %arg1, %c8_i32 : i32
    %4 = tpu.assume_multiple %3, 8 : i32
    %cst = arith.constant 0.000000e+00 : f32
    %5 = vector.broadcast %cst : f32 to vector<128x128xf32>
    %c0_i32_1 = arith.constant 0 : i32
    %6 = arith.addi %4, %c0_i32_1 : i32
    %7 = arith.index_cast %6 : i32 to index
    %c0 = arith.constant 0 : index
    %c0_2 = arith.constant 0 : index
    %8 = vector.load %arg9[%7, %c0, %c0_2] : memref<18x18x4xf32, #tpu.memory_space<vmem>>, vector<8x16x4xf32>
    %9 = vector.shape_cast %8 : vector<8x16x4xf32> to vector<128x4xf32>
    %c0_3 = arith.constant 0 : index
    %c0_4 = arith.constant 0 : index
    %10 = vector.load %arg3[%c0_3, %c0_4] : memref<36x128xf32, #tpu.memory_space<vmem>>, vector<4x128xf32>
    %cst_5 = arith.constant dense<0.000000e+00> : vector<128x128xf32>
    %11 = tpu.matmul %9, %10, %cst_5 {dimension_numbers = #tpu.dot_dimension_numbers<[1], [0], [0], [1], [0, 0, 1, 1], [], []>} : vector<128x4xf32>, vector<4x128xf32>, vector<128x128xf32> -> vector<128x128xf32>
    %12 = arith.addf %5, %11 : vector<128x128xf32>
    %c0_i32_6 = arith.constant 0 : i32
    %13 = arith.addi %4, %c0_i32_6 : i32
    %14 = arith.index_cast %13 : i32 to index
    %c1 = arith.constant 1 : index
    %c0_7 = arith.constant 0 : index
    %15 = vector.load %arg9[%14, %c1, %c0_7] : memref<18x18x4xf32, #tpu.memory_space<vmem>>, vector<8x16x4xf32>
    %16 = vector.shape_cast %15 : vector<8x16x4xf32> to vector<128x4xf32>
    %c4 = arith.constant 4 : index
    %c0_8 = arith.constant 0 : index
    %17 = vector.load %arg3[%c4, %c0_8] : memref<36x128xf32, #tpu.memory_space<vmem>>, vector<4x128xf32>
    %cst_9 = arith.constant dense<0.000000e+00> : vector<128x128xf32>
    %18 = tpu.matmul %16, %17, %cst_9 {dimension_numbers = #tpu.dot_dimension_numbers<[1], [0], [0], [1], [0, 0, 1, 1], [], []>} : vector<128x4xf32>, vector<4x128xf32>, vector<128x128xf32> -> vector<128x128xf32>
    %19 = arith.addf %12, %18 : vector<128x128xf32>
    %c0_i32_10 = arith.constant 0 : i32
    %20 = arith.addi %4, %c0_i32_10 : i32
    %21 = arith.index_cast %20 : i32 to index
    %c2 = arith.constant 2 : index
    %c0_11 = arith.constant 0 : index
    %22 = vector.load %arg9[%21, %c2, %c0_11] : memref<18x18x4xf32, #tpu.memory_space<vmem>>, vector<8x16x4xf32>
    %23 = vector.shape_cast %22 : vector<8x16x4xf32> to vector<128x4xf32>
    %c8 = arith.constant 8 : index
    %c0_12 = arith.constant 0 : index
    %24 = vector.load %arg3[%c8, %c0_12] : memref<36x128xf32, #tpu.memory_space<vmem>>, vector<4x128xf32>
    %cst_13 = arith.constant dense<0.000000e+00> : vector<128x128xf32>
    %25 = tpu.matmul %23, %24, %cst_13 {dimension_numbers = #tpu.dot_dimension_numbers<[1], [0], [0], [1], [0, 0, 1, 1], [], []>} : vector<128x4xf32>, vector<4x128xf32>, vector<128x128xf32> -> vector<128x128xf32>
    %26 = arith.addf %19, %25 : vector<128x128xf32>
    %c1_i32 = arith.constant 1 : i32
    %27 = arith.addi %4, %c1_i32 : i32
    %28 = arith.index_cast %27 : i32 to index
    %c0_14 = arith.constant 0 : index
    %c0_15 = arith.constant 0 : index
    %29 = vector.load %arg9[%28, %c0_14, %c0_15] : memref<18x18x4xf32, #tpu.memory_space<vmem>>, vector<8x16x4xf32>
    %30 = vector.shape_cast %29 : vector<8x16x4xf32> to vector<128x4xf32>
    %c12 = arith.constant 12 : index
    %c0_16 = arith.constant 0 : index
    %31 = vector.load %arg3[%c12, %c0_16] : memref<36x128xf32, #tpu.memory_space<vmem>>, vector<4x128xf32>
    %cst_17 = arith.constant dense<0.000000e+00> : vector<128x128xf32>
    %32 = tpu.matmul %30, %31, %cst_17 {dimension_numbers = #tpu.dot_dimension_numbers<[1], [0], [0], [1], [0, 0, 1, 1], [], []>} : vector<128x4xf32>, vector<4x128xf32>, vector<128x128xf32> -> vector<128x128xf32>
    %33 = arith.addf %26, %32 : vector<128x128xf32>
    %c1_i32_18 = arith.constant 1 : i32
    %34 = arith.addi %4, %c1_i32_18 : i32
    %35 = arith.index_cast %34 : i32 to index
    %c1_19 = arith.constant 1 : index
    %c0_20 = arith.constant 0 : index
    %36 = vector.load %arg9[%35, %c1_19, %c0_20] : memref<18x18x4xf32, #tpu.memory_space<vmem>>, vector<8x16x4xf32>
    %37 = vector.shape_cast %36 : vector<8x16x4xf32> to vector<128x4xf32>
    %c16 = arith.constant 16 : index
    %c0_21 = arith.constant 0 : index
    %38 = vector.load %arg3[%c16, %c0_21] : memref<36x128xf32, #tpu.memory_space<vmem>>, vector<4x128xf32>
    %cst_22 = arith.constant dense<0.000000e+00> : vector<128x128xf32>
    %39 = tpu.matmul %37, %38, %cst_22 {dimension_numbers = #tpu.dot_dimension_numbers<[1], [0], [0], [1], [0, 0, 1, 1], [], []>} : vector<128x4xf32>, vector<4x128xf32>, vector<128x128xf32> -> vector<128x128xf32>
    %40 = arith.addf %33, %39 : vector<128x128xf32>
    %c1_i32_23 = arith.constant 1 : i32
    %41 = arith.addi %4, %c1_i32_23 : i32
    %42 = arith.index_cast %41 : i32 to index
    %c2_24 = arith.constant 2 : index
    %c0_25 = arith.constant 0 : index
    %43 = vector.load %arg9[%42, %c2_24, %c0_25] : memref<18x18x4xf32, #tpu.memory_space<vmem>>, vector<8x16x4xf32>
    %44 = vector.shape_cast %43 : vector<8x16x4xf32> to vector<128x4xf32>
    %c20 = arith.constant 20 : index
    %c0_26 = arith.constant 0 : index
    %45 = vector.load %arg3[%c20, %c0_26] : memref<36x128xf32, #tpu.memory_space<vmem>>, vector<4x128xf32>
    %cst_27 = arith.constant dense<0.000000e+00> : vector<128x128xf32>
    %46 = tpu.matmul %44, %45, %cst_27 {dimension_numbers = #tpu.dot_dimension_numbers<[1], [0], [0], [1], [0, 0, 1, 1], [], []>} : vector<128x4xf32>, vector<4x128xf32>, vector<128x128xf32> -> vector<128x128xf32>
    %47 = arith.addf %40, %46 : vector<128x128xf32>
    %c2_i32 = arith.constant 2 : i32
    %48 = arith.addi %4, %c2_i32 : i32
    %49 = arith.index_cast %48 : i32 to index
    %c0_28 = arith.constant 0 : index
    %c0_29 = arith.constant 0 : index
    %50 = vector.load %arg9[%49, %c0_28, %c0_29] : memref<18x18x4xf32, #tpu.memory_space<vmem>>, vector<8x16x4xf32>
    %51 = vector.shape_cast %50 : vector<8x16x4xf32> to vector<128x4xf32>
    %c24 = arith.constant 24 : index
    %c0_30 = arith.constant 0 : index
    %52 = vector.load %arg3[%c24, %c0_30] : memref<36x128xf32, #tpu.memory_space<vmem>>, vector<4x128xf32>
    %cst_31 = arith.constant dense<0.000000e+00> : vector<128x128xf32>
    %53 = tpu.matmul %51, %52, %cst_31 {dimension_numbers = #tpu.dot_dimension_numbers<[1], [0], [0], [1], [0, 0, 1, 1], [], []>} : vector<128x4xf32>, vector<4x128xf32>, vector<128x128xf32> -> vector<128x128xf32>
    %54 = arith.addf %47, %53 : vector<128x128xf32>
    %c2_i32_32 = arith.constant 2 : i32
    %55 = arith.addi %4, %c2_i32_32 : i32
    %56 = arith.index_cast %55 : i32 to index
    %c1_33 = arith.constant 1 : index
    %c0_34 = arith.constant 0 : index
    %57 = vector.load %arg9[%56, %c1_33, %c0_34] : memref<18x18x4xf32, #tpu.memory_space<vmem>>, vector<8x16x4xf32>
    %58 = vector.shape_cast %57 : vector<8x16x4xf32> to vector<128x4xf32>
    %c28 = arith.constant 28 : index
    %c0_35 = arith.constant 0 : index
    %59 = vector.load %arg3[%c28, %c0_35] : memref<36x128xf32, #tpu.memory_space<vmem>>, vector<4x128xf32>
    %cst_36 = arith.constant dense<0.000000e+00> : vector<128x128xf32>
    %60 = tpu.matmul %58, %59, %cst_36 {dimension_numbers = #tpu.dot_dimension_numbers<[1], [0], [0], [1], [0, 0, 1, 1], [], []>} : vector<128x4xf32>, vector<4x128xf32>, vector<128x128xf32> -> vector<128x128xf32>
    %61 = arith.addf %54, %60 : vector<128x128xf32>
    %c2_i32_37 = arith.constant 2 : i32
    %62 = arith.addi %4, %c2_i32_37 : i32
    %63 = arith.index_cast %62 : i32 to index
    %c2_38 = arith.constant 2 : index
    %c0_39 = arith.constant 0 : index
    %64 = vector.load %arg9[%63, %c2_38, %c0_39] : memref<18x18x4xf32, #tpu.memory_space<vmem>>, vector<8x16x4xf32>
    %65 = vector.shape_cast %64 : vector<8x16x4xf32> to vector<128x4xf32>
    %c32 = arith.constant 32 : index
    %c0_40 = arith.constant 0 : index
    %66 = vector.load %arg3[%c32, %c0_40] : memref<36x128xf32, #tpu.memory_space<vmem>>, vector<4x128xf32>
    %cst_41 = arith.constant dense<0.000000e+00> : vector<128x128xf32>
    %67 = tpu.matmul %65, %66, %cst_41 {dimension_numbers = #tpu.dot_dimension_numbers<[1], [0], [0], [1], [0, 0, 1, 1], [], []>} : vector<128x4xf32>, vector<4x128xf32>, vector<128x128xf32> -> vector<128x128xf32>
    %68 = arith.addf %61, %67 : vector<128x128xf32>
    %c0_42 = arith.constant 0 : index
    %c0_43 = arith.constant 0 : index
    %69 = vector.load %arg4[%c0_42, %c0_43] : memref<1x128xf32, #tpu.memory_space<vmem>>, vector<1x128xf32>
    %70 = vector.broadcast %69 : vector<1x128xf32> to vector<128x128xf32>
    %71 = arith.addf %68, %70 : vector<128x128xf32>
    %c0_44 = arith.constant 0 : index
    %c0_45 = arith.constant 0 : index
    %c0_46 = arith.constant 0 : index
    %72 = vector.load %arg8[%c0_44, %c0_45, %c0_46] : memref<1x2x128xf32, #tpu.memory_space<vmem>>, vector<1x1x128xf32>
    %73 = vector.shape_cast %72 : vector<1x1x128xf32> to vector<1x128xf32>
    %cst_47 = arith.constant dense<0.000000e+00> : vector<128xf32>
    %74 = vector.multi_reduction <add>, %71, %cst_47 [0] : vector<128x128xf32> to vector<128xf32>
    %75 = vector.shape_cast %74 : vector<128xf32> to vector<1x128xf32>
    %76 = arith.addf %73, %75 : vector<1x128xf32>
    %c0_48 = arith.constant 0 : index
    %c0_49 = arith.constant 0 : index
    %c0_50 = arith.constant 0 : index
    %77 = vector.load %arg8[%c0_48, %c0_49, %c0_50] : memref<1x2x128xf32, #tpu.memory_space<vmem>>, vector<1x1x128xf32>
    %78 = vector.shape_cast %77 : vector<1x1x128xf32> to vector<1x128xf32>
    %79 = vector.shape_cast %76 : vector<1x128xf32> to vector<1x1x128xf32>
    tpu.vector_store %arg8[%c0_48, %c0_49, %c0_50], %79 {strides = array<i32>} : memref<1x2x128xf32, #tpu.memory_space<vmem>>, vector<1x1x128xf32>,
    %c0_51 = arith.constant 0 : index
    %c1_52 = arith.constant 1 : index
    %c0_53 = arith.constant 0 : index
    %80 = vector.load %arg8[%c0_51, %c1_52, %c0_53] : memref<1x2x128xf32, #tpu.memory_space<vmem>>, vector<1x1x128xf32>
    %81 = vector.shape_cast %80 : vector<1x1x128xf32> to vector<1x128xf32>
    %82 = arith.mulf %71, %71 : vector<128x128xf32>
    %cst_54 = arith.constant dense<0.000000e+00> : vector<128xf32>
    %83 = vector.multi_reduction <add>, %82, %cst_54 [0] : vector<128x128xf32> to vector<128xf32>
    %84 = vector.shape_cast %83 : vector<128xf32> to vector<1x128xf32>
    %85 = arith.addf %81, %84 : vector<1x128xf32>
    %c0_55 = arith.constant 0 : index
    %c1_56 = arith.constant 1 : index
    %c0_57 = arith.constant 0 : index
    %86 = vector.load %arg8[%c0_55, %c1_56, %c0_57] : memref<1x2x128xf32, #tpu.memory_space<vmem>>, vector<1x1x128xf32>
    %87 = vector.shape_cast %86 : vector<1x1x128xf32> to vector<1x128xf32>
    %88 = vector.shape_cast %85 : vector<1x128xf32> to vector<1x1x128xf32>
    tpu.vector_store %arg8[%c0_55, %c1_56, %c0_57], %88 {strides = array<i32>} : memref<1x2x128xf32, #tpu.memory_space<vmem>>, vector<1x1x128xf32>,
    %c0_58 = arith.constant 0 : index
    %c0_59 = arith.constant 0 : index
    %c0_60 = arith.constant 0 : index
    %89 = vector.load %arg7[%c0_58, %c0_59, %c0_60] : memref<1x128x128xf32, #tpu.memory_space<vmem>>, vector<1x128x128xf32>
    %90 = vector.shape_cast %89 : vector<1x128x128xf32> to vector<128x128xf32>
    %91 = vector.shape_cast %71 : vector<128x128xf32> to vector<1x128x128xf32>
    tpu.vector_store %arg7[%c0_58, %c0_59, %c0_60], %91 {strides = array<i32>} : memref<1x128x128xf32, #tpu.memory_space<vmem>>, vector<1x128x128xf32>,
    return
  }
  func.func @transform_0(%arg0: i32, %arg1: i32) -> (i32, i32, i32) {
    %c0_i32 = arith.constant 0 : i32
    %c0_i32_0 = arith.constant 0 : i32
    %c0_i32_1 = arith.constant 0 : i32
    return %arg0, %c0_i32, %c0_i32_0 : i32, i32, i32
  }
  func.func @transform_1(%arg0: i32, %arg1: i32) -> (i32, i32) {
    %c0_i32 = arith.constant 0 : i32
    %c0_i32_0 = arith.constant 0 : i32
    %c0_i32_1 = arith.constant 0 : i32
    return %c0_i32, %c0_i32_0 : i32, i32
  }
  func.func @transform_2(%arg0: i32, %arg1: i32) -> (i32, i32) {
    %c0_i32 = arith.constant 0 : i32
    %c0_i32_0 = arith.constant 0 : i32
    %c0_i32_1 = arith.constant 0 : i32
    return %c0_i32, %c0_i32_0 : i32, i32
  }
  func.func @transform_3(%arg0: i32, %arg1: i32) -> (i32, i32) {
    %c0_i32 = arith.constant 0 : i32
    %c0_i32_0 = arith.constant 0 : i32
    %c0_i32_1 = arith.constant 0 : i32
    return %c0_i32, %c0_i32_0 : i32, i32
  }
  func.func @transform_4(%arg0: i32, %arg1: i32) -> (i32, i32) {
    %c0_i32 = arith.constant 0 : i32
    %c0_i32_0 = arith.constant 0 : i32
    %c0_i32_1 = arith.constant 0 : i32
    return %c0_i32, %c0_i32_0 : i32, i32
  }
  func.func @transform_5(%arg0: i32, %arg1: i32) -> (i32, i32, i32) {
    %c0_i32 = arith.constant 0 : i32
    %c0_i32_0 = arith.constant 0 : i32
    return %arg0, %arg1, %c0_i32 : i32, i32, i32
  }
  func.func @transform_6(%arg0: i32, %arg1: i32) -> (i32, i32, i32) {
    %c0_i32 = arith.constant 0 : i32
    %c0_i32_0 = arith.constant 0 : i32
    %c0_i32_1 = arith.constant 0 : i32
    return %arg0, %c0_i32, %c0_i32_0 : i32, i32, i32
  }
}

</mosaic_0001>

<bundles_post_ra>
// kernel: tpu_custom_call.1
= control target key start
LH: loop header
LB: loop body
LE: loop exit
PB: predicated region body
PF: predicated region fallthrough
CT: control target
= control target key end

     0   :  { %12 = vsyncpa [#allocation4], 0  ;;  %s4667_s0 = inlined_call_operand.vmem [shape: f32[2,256,4], index: 0, kind: input, shape index: {}]   ;;  %s4668_s1 = inlined_call_operand.vmem [shape: f32[36,128], index: 1, kind: input, shape index: {}]   ;;  %s4669_s2 = inlined_call_operand.vmem [shape: f32[1,128], index: 2, kind: input, shape index: {}]   ;;  %s4670_s3 = inlined_call_operand.vmem [shape: f32[1,4], index: 3, kind: input, shape index: {}]   ;;  %s4671_s4 = inlined_call_operand.vmem [shape: f32[1,4], index: 4, kind: input, shape index: {}]   ;;  %s4672_s5 = inlined_call_operand.hbm [shape: f32[2,256,128], index: 5, kind: output, shape index: {0}]   ;;  %s4673_s6 = inlined_call_operand.hbm [shape: f32[2,2,128], index: 6, kind: output, shape index: {1}]  }
   0x1   :  { %14 = vsyncpa [#allocation4 + $0x1], 0 }
   0x2   :  { %15 = vsyncpa [#allocation6], 0 }
   0x3   :  { %17 = vsyncpa [#allocation6 + $0x1], 0  ;;  %s3784_s21 = smov 0   ;;  %s3786_s22 = smov 0  }
   0x4   :  { %s3788_s23 = smov 0   ;;  %s3790_s3 = smov 0  }
   0x5   :  { %s3792_s24 = smov 0   ;;  %s3794_s4 = smov 0  }
   0x6   :  { %s3796_s25 = smov 0   ;;  %s3798_s26 = smov 0  }
   0x7   :  { %s3800_s27 = smov 0   ;;  %s3802_s28 = smov 0  }
   0x8   :  { %s3804_s29 = smov 0  }
   0x9 LB: > { %4680 = sst [smem:[#allocation9_spill]] %s3734_s27  ;;  %s2697_s30 = sadd.s32 4294967295, %s3742_s29   ;;  %s3742_s29 = sphi %s3804_s29, %s23_s29   ;;  %s3738_s28 = sphi %s3802_s28, %s4695_s28   ;;  %s3734_s27 = sphi %s3800_s27, %s4694_s27   ;;  %s3730_s26 = sphi %s3798_s26, %s4693_s26   ;;  %s3726_s25 = sphi %s3796_s25, %s4692_s25   ;;  %s3722_s4 = sphi %s3794_s4, %s4701_s4   ;;  %s3718_s24 = sphi %s3792_s24, %s4700_s24   ;;  %s3714_s3 = sphi %s3790_s3, %s4699_s3   ;;  %s3710_s23 = sphi %s3788_s23, %s4698_s23   ;;  %s3706_s22 = sphi %s3786_s22, %s4697_s22   ;;  %s3702_s21 = sphi %s3784_s21, %s4696_s21  }
   0xa   : > { %4681 = sst [smem:[#allocation10_spill]] %s3738_s28  ;;  %s2698_s7 = sadd.s32 4294967294, %s3742_s29  }
   0xb   : > { %s32_s8 = sadd.s32 1, %s3734_s27  ;;  %s35_s9 = sadd.s32 1, %s3738_s28 }
   0xc   : > { %p33_p0 = scmp.ge.s32.totalorder %s32_s8, 2  ;;  %s154_s10 = sadd.s32 1, %s3722_s4 }
   0xd   : > { %p164_p1 = scmp.ne.s32.totalorder %s3722_s4, %s3718_s24  ;;  %p3846_p2 = scmp.eq.s32.totalorder %s2697_s30, 3 }
   0xe   : > { %s4703_s8 = smov (%p33_p0, %s32_s8), 0  ;;  %s4705_s9 = smov (!%p33_p0, %s35_s9), %s3738_s28 }
   0xf   : > { %4683 = sst [smem:[#allocation11_spill]] %s4703_s8  ;;  %s150_s12 = ssub.s32 %s3734_s27, %s4703_s8 }
  0x10   : > { %p3857_p3 = por %p3846_p2, %p164_p1  ;;  %p37_p4 = scmp.ge.s32.totalorder %s4705_s9, 2 }
  0x11   : > { %p170_p5 = scmp.ne.s32.totalorder %s3718_s24, %s3714_s3  ;;  %p3863_p6 = scmp.eq.s32.totalorder %s2698_s7, 3 }
  0x12   : > { %s180_s15 = sadd.s32 1, %s3710_s23  ;;  %s4707_s9 = smov (%p37_p4, %s4705_s9), 0 }
  0x13   : > { %4686 = sst [smem:[#allocation12_spill]] %s4707_s9  ;;  %p3872_p7 = por %p3863_p6, %p170_p5 }
  0x14   : > { %p190_p8 = scmp.ne.s32.totalorder %s3710_s23, %s3706_s22  ;;  %s149_s17 = ssub.s32 %s3738_s28, %s4707_s9 }
  0x15   : > { %p196_p9 = scmp.ne.s32.totalorder %s3706_s22, %s3702_s21  ;;  %s151_s18 = sor.u32 %s150_s12, %s149_s17 }
  0x16   : > { %p178_p10 = scmp.eq.s32.totalorder %s149_s17, 0  ;;  %p152_p11 = scmp.eq.s32.totalorder %s151_s18, 0 }
  0x17   : > { %p3884_p12 = por %p190_p8, %p3846_p2  ;;  %p3896_p13 = por %p196_p9, %p3863_p6 }
  0x18   : > { %s3889_s20 = scalar_select %p178_p10, %s3710_s23, %s180_s15  }
  0x19   : > { %s3892_s30 = scalar_select %p152_p11, %s3722_s4, %s154_s10  }
  0x1a   : > { %p2701_p0 = scmp.ge.s32.totalorder %s3742_s29, 1  ;;  %p235_p1 = scmp.lt.s32.totalorder %s3742_s29, 5 }
  0x1c   : > { %p236_p4 = pnand %p2701_p0, %p235_p1 }
  0x1d   : > { %s260_s11 = sand.u32 (!%p236_p4), 1, %s3718_s24   ;;  %s4678_s12 = sand.u32 (!%p236_p4), 1, %s3706_s22  }
  0x1e   : > { %239 = sbr.rel (%p236_p4) target bundleno = 493 (0x1ed), region = 40  ;;  %s2702_s10 = sshll.u32 (!%p236_p4), %s260_s11, 7 }
  0x1f   : > { %s2703_s14 = sshll.u32 (!%p236_p4), %s4678_s12, 1  ;;  %p270_p2 = scmp.lt.s32.totalorder (!%p236_p4), %s3730_s26, 1 }
  0x20   : > { %s3915_s28 = scalar_lea.vmem (!%p236_p4), [#allocation3], %s2702_s10  ;;  %s3917_s27 = scalar_lea.vmem (!%p236_p4), [#allocation5], %s2703_s14 }
  0x21   : > { %p2706_p5 = scmp.ne.s32.totalorder (!%p236_p4), %s3726_s25, 0 }
  0x25   : > { %s271_s15 = scalar_select %p270_p2, %s3730_s26, 1 }
  0x26   : > { %279 = sbr.rel (%p2706_p5) target bundleno = 83 (0x53), region = 44  ;;  %vm281_vm0 = vcmask (!%p2706_p5), 31744   ;;  %vm284_vm1 = vcmask (!%p2706_p5), 25600   ;;  %v3744_v3 = vmov (!%p2706_p5), 0.0  }
  0x27   : > { %s2971_s17 = sshll.u32 %s271_s15, 8  ;;  %286 = vst.msk [vmem:[#allocation2 + $0x18] sm:$0xff] (!%p2706_p5), %vm281_vm0, %v3744_v3  ;;  %280 = vst [vmem:[%s3917_s27] sm:$0x3] (!%p2706_p5), %v3744_v3 }
  0x28   : > { %s3913_s8 = scalar_lea.vmem %s4667_s0, %s2971_s17  ;;  %282 = vst.msk [vmem:[#allocation2] sm:$0xff] (!%p2706_p5), %vm281_vm0, %v3744_v3  ;;  %283 = vst.msk [vmem:[#allocation2 + $0x8] sm:$0xff] (!%p2706_p5), %vm281_vm0, %v3744_v3 }
  0x29   : > { %v337_v0 = vld [vmem:[%s3913_s8] sm:$0xff] (!%p2706_p5)  ;;  %v338_v1 = vld [vmem:[%s3913_s8 + $0x8] sm:$0xff] (!%p2706_p5)  ;;  %v339_v2 = vld [vmem:[%s3913_s8 + $0x10] sm:$0xff] (!%p2706_p5)  ;;  %287 = vst.msk [vmem:[#allocation2 + $0x20] sm:$0xff] (!%p2706_p5), %vm281_vm0, %v3744_v3 }
  0x2a   : > { %289 = vst.msk [vmem:[#allocation2 + $0x30] sm:$0xff] (!%p2706_p5), %vm281_vm0, %v3744_v3  ;;  %290 = vst.msk [vmem:[#allocation2 + $0x38] sm:$0xff] (!%p2706_p5), %vm281_vm0, %v3744_v3  ;;  %v340_v4 = vld [vmem:[%s3913_s8 + $0x18] sm:$0xff] (!%p2706_p5)  ;;  %v341_v5 = vld [vmem:[%s3913_s8 + $0x20] sm:$0xff] (!%p2706_p5) }
  0x2b   : > { %292 = vst.msk [vmem:[#allocation2 + $0x48] sm:$0xff] (!%p2706_p5), %vm281_vm0, %v3744_v3  ;;  %293 = vst.msk [vmem:[#allocation2 + $0x50] sm:$0xff] (!%p2706_p5), %vm281_vm0, %v3744_v3  ;;  %v342_v6 = vld [vmem:[%s3913_s8 + $0x28] sm:$0xff] (!%p2706_p5)  ;;  %v343_v7 = vld [vmem:[%s3913_s8 + $0x30] sm:$0xff] (!%p2706_p5) }
  0x2c   : > { %295 = vst.msk [vmem:[#allocation2 + $0x60] sm:$0xff] (!%p2706_p5), %vm281_vm0, %v3744_v3  ;;  %296 = vst.msk [vmem:[#allocation2 + $0x68] sm:$0xff] (!%p2706_p5), %vm281_vm0, %v3744_v3  ;;  %v344_v8 = vld [vmem:[%s3913_s8 + $0x38] sm:$0xff] (!%p2706_p5)  ;;  %v345_v9 = vld [vmem:[%s3913_s8 + $0x40] sm:$0xff] (!%p2706_p5) }
  0x2d   : > { %298 = vst.msk [vmem:[#allocation2 + $0x78] sm:$0xff] %vm281_vm0, %v3744_v3  ;;  %299 = vst.msk [vmem:[#allocation2 + $0x80] sm:$0xff] %vm281_vm0, %v3744_v3  ;;  %v346_v10 = vld [vmem:[%s3913_s8 + $0x48] sm:$0xff]  ;;  %v347_v11 = vld [vmem:[%s3913_s8 + $0x50] sm:$0xff] }
  0x2e   : > { %301 = vst.msk [vmem:[#allocation2 + $0x90] sm:$0xff] %vm281_vm0, %v3744_v3  ;;  %302 = vst.msk [vmem:[#allocation2 + $0x98] sm:$0xff] %vm281_vm0, %v3744_v3  ;;  %v348_v12 = vld [vmem:[%s3913_s8 + $0x58] sm:$0xff]  ;;  %v349_v13 = vld [vmem:[%s3913_s8 + $0x60] sm:$0xff] }
  0x2f   : > { %304 = vst.msk [vmem:[#allocation2 + $0xa8] sm:$0xff] %vm281_vm0, %v3744_v3  ;;  %305 = vst.msk [vmem:[#allocation2 + $0xb0] sm:$0xff] %vm281_vm0, %v3744_v3  ;;  %v350_v14 = vld [vmem:[%s3913_s8 + $0x68] sm:$0xff]  ;;  %v351_v15 = vld [vmem:[%s3913_s8 + $0x70] sm:$0xff] }
  0x30   : > { %307 = vst.msk [vmem:[#allocation2 + $0xc0] sm:$0xff] %vm281_vm0, %v3744_v3  ;;  %308 = vst.msk [vmem:[#allocation2 + $0xc8] sm:$0xff] %vm281_vm0, %v3744_v3  ;;  %v352_v16 = vld [vmem:[%s3913_s8 + $0x78] sm:$0xff]  ;;  %v353_v17 = vld [vmem:[%s3913_s8 + $0x80] sm:$0xff] }
  0x31   : > { %310 = vst.msk [vmem:[#allocation2 + $0xd8] sm:$0xff] %vm281_vm0, %v3744_v3  ;;  %311 = vst.msk [vmem:[#allocation2 + $0xe0] sm:$0xff] %vm281_vm0, %v3744_v3  ;;  %v354_v18 = vld [vmem:[%s3913_s8 + $0x88] sm:$0xff]  ;;  %v355_v19 = vld [vmem:[%s3913_s8 + $0x90] sm:$0xff] }
  0x32   : > { %313 = vst.msk [vmem:[#allocation2 + $0xf0] sm:$0xff] %vm281_vm0, %v3744_v3  ;;  %314 = vst.msk [vmem:[#allocation2 + $0xf8] sm:$0xff] %vm281_vm0, %v3744_v3  ;;  %v356_v20 = vld [vmem:[%s3913_s8 + $0x98] sm:$0xff]  ;;  %v357_v21 = vld [vmem:[%s3913_s8 + $0xa0] sm:$0xff] }
  0x33   : > { %316 = vst.msk [vmem:[#allocation2 + $0x108] sm:$0xff] %vm281_vm0, %v3744_v3  ;;  %317 = vst.msk [vmem:[#allocation2 + $0x110] sm:$0xff] %vm281_vm0, %v3744_v3  ;;  %v358_v22 = vld [vmem:[%s3913_s8 + $0xa8] sm:$0xff]  ;;  %v359_v23 = vld [vmem:[%s3913_s8 + $0xb0] sm:$0xff] }
  0x34   : > { %319 = vst.msk [vmem:[#allocation2 + $0x120] sm:$0xff] %vm281_vm0, %v3744_v3  ;;  %320 = vst.msk [vmem:[#allocation2 + $0x128] sm:$0xff] %vm281_vm0, %v3744_v3  ;;  %v360_v24 = vld [vmem:[%s3913_s8 + $0xb8] sm:$0xff]  ;;  %v361_v25 = vld [vmem:[%s3913_s8 + $0xc0] sm:$0xff] }
  0x35   : > { %322 = vst.msk [vmem:[#allocation2 + $0x138] sm:$0xff] %vm281_vm0, %v3744_v3  ;;  %323 = vst.msk [vmem:[#allocation2 + $0x140] sm:$0xff] %vm281_vm0, %v3744_v3  ;;  %v362_v26 = vld [vmem:[%s3913_s8 + $0xc8] sm:$0xff]  ;;  %v363_v27 = vld [vmem:[%s3913_s8 + $0xd0] sm:$0xff] }
  0x36   : > { %325 = vst.msk [vmem:[#allocation2 + $0x150] sm:$0xff] %vm281_vm0, %v3744_v3  ;;  %326 = vst.msk [vmem:[#allocation2 + $0x158] sm:$0xff] %vm281_vm0, %v3744_v3  ;;  %v364_v28 = vld [vmem:[%s3913_s8 + $0xd8] sm:$0xff]  ;;  %v365_v29 = vld [vmem:[%s3913_s8 + $0xe0] sm:$0xff] }
  0x37   : > { %328 = vst.msk [vmem:[#allocation2 + $0x168] sm:$0xff] %vm281_vm0, %v3744_v3  ;;  %329 = vst.msk [vmem:[#allocation2 + $0x170] sm:$0xff] %vm281_vm0, %v3744_v3  ;;  %v366_v30 = vld [vmem:[%s3913_s8 + $0xe8] sm:$0xff]  ;;  %v367_v31 = vld [vmem:[%s3913_s8 + $0xf0] sm:$0xff] }
  0x38   : > { %331 = vst.msk [vmem:[#allocation2 + $0x180] sm:$0xff] %vm281_vm0, %v3744_v3  ;;  %332 = vst.msk [vmem:[#allocation2 + $0x188] sm:$0xff] %vm281_vm0, %v3744_v3  ;;  %v368_v32 = vld [vmem:[%s3913_s8 + $0xf8] sm:$0xff] }
  0x39   : > { %334 = vst.msk [vmem:[#allocation2 + $0x198] sm:$0xff] %vm281_vm0, %v3744_v3  ;;  %335 = vst.msk [vmem:[#allocation2 + $0x1a0] sm:$0xff] %vm281_vm0, %v3744_v3 }
  0x3a   : > { %288 = vst.msk [vmem:[#allocation2 + $0x28] sm:$0x3] %vm284_vm1, %v3744_v3  ;;  %285 = vst.msk [vmem:[#allocation2 + $0x10] sm:$0x3] %vm284_vm1, %v3744_v3 }
  0x3b   : > { %291 = vst.msk [vmem:[#allocation2 + $0x40] sm:$0x3] %vm284_vm1, %v3744_v3  ;;  %294 = vst.msk [vmem:[#allocation2 + $0x58] sm:$0x3] %vm284_vm1, %v3744_v3 }
  0x3c   : > { %297 = vst.msk [vmem:[#allocation2 + $0x70] sm:$0x3] %vm284_vm1, %v3744_v3  ;;  %300 = vst.msk [vmem:[#allocation2 + $0x88] sm:$0x3] %vm284_vm1, %v3744_v3 }
  0x3d   : > { %303 = vst.msk [vmem:[#allocation2 + $0xa0] sm:$0x3] %vm284_vm1, %v3744_v3  ;;  %306 = vst.msk [vmem:[#allocation2 + $0xb8] sm:$0x3] %vm284_vm1, %v3744_v3 }
  0x3e   : > { %309 = vst.msk [vmem:[#allocation2 + $0xd0] sm:$0x3] %vm284_vm1, %v3744_v3  ;;  %312 = vst.msk [vmem:[#allocation2 + $0xe8] sm:$0x3] %vm284_vm1, %v3744_v3 }
  0x3f   : > { %315 = vst.msk [vmem:[#allocation2 + $0x100] sm:$0x3] %vm284_vm1, %v3744_v3  ;;  %318 = vst.msk [vmem:[#allocation2 + $0x118] sm:$0x3] %vm284_vm1, %v3744_v3 }
  0x40   : > { %321 = vst.msk [vmem:[#allocation2 + $0x130] sm:$0x3] %vm284_vm1, %v3744_v3  ;;  %324 = vst.msk [vmem:[#allocation2 + $0x148] sm:$0x3] %vm284_vm1, %v3744_v3 }
  0x41   : > { %327 = vst.msk [vmem:[#allocation2 + $0x160] sm:$0x3] %vm284_vm1, %v3744_v3  ;;  %330 = vst.msk [vmem:[#allocation2 + $0x178] sm:$0x3] %vm284_vm1, %v3744_v3 }
  0x42   : > { %333 = vst.msk [vmem:[#allocation2 + $0x190] sm:$0x3] %vm284_vm1, %v3744_v3  ;;  %336 = vst.msk [vmem:[#allocation2 + $0x1a8] sm:$0x3] %vm284_vm1, %v3744_v3 }
  0x43   : > { %370 = vst.msk [vmem:[#allocation2 + $0x19] sm:$0xff] %vm281_vm0, %v337_v0  ;;  %371 = vst.msk [vmem:[#allocation2 + $0x21] sm:$0xff] %vm281_vm0, %v338_v1 }
  0x44   : > { %372 = vst.msk [vmem:[#allocation2 + $0x31] sm:$0xff] %vm281_vm0, %v339_v2  ;;  %373 = vst.msk [vmem:[#allocation2 + $0x39] sm:$0xff] %vm281_vm0, %v340_v4 }
  0x45   : > { %374 = vst.msk [vmem:[#allocation2 + $0x49] sm:$0xff] %vm281_vm0, %v341_v5  ;;  %375 = vst.msk [vmem:[#allocation2 + $0x51] sm:$0xff] %vm281_vm0, %v342_v6 }
  0x46   : > { %376 = vst.msk [vmem:[#allocation2 + $0x61] sm:$0xff] %vm281_vm0, %v343_v7  ;;  %377 = vst.msk [vmem:[#allocation2 + $0x69] sm:$0xff] %vm281_vm0, %v344_v8 }
  0x47   : > { %378 = vst.msk [vmem:[#allocation2 + $0x79] sm:$0xff] %vm281_vm0, %v345_v9  ;;  %379 = vst.msk [vmem:[#allocation2 + $0x81] sm:$0xff] %vm281_vm0, %v346_v10 }
  0x48   : > { %380 = vst.msk [vmem:[#allocation2 + $0x91] sm:$0xff] %vm281_vm0, %v347_v11  ;;  %381 = vst.msk [vmem:[#allocation2 + $0x99] sm:$0xff] %vm281_vm0, %v348_v12 }
  0x49   : > { %382 = vst.msk [vmem:[#allocation2 + $0xa9] sm:$0xff] %vm281_vm0, %v349_v13  ;;  %383 = vst.msk [vmem:[#allocation2 + $0xb1] sm:$0xff] %vm281_vm0, %v350_v14 }
  0x4a   : > { %384 = vst.msk [vmem:[#allocation2 + $0xc1] sm:$0xff] %vm281_vm0, %v351_v15  ;;  %385 = vst.msk [vmem:[#allocation2 + $0xc9] sm:$0xff] %vm281_vm0, %v352_v16 }
  0x4b   : > { %386 = vst.msk [vmem:[#allocation2 + $0xd9] sm:$0xff] %vm281_vm0, %v353_v17  ;;  %387 = vst.msk [vmem:[#allocation2 + $0xe1] sm:$0xff] %vm281_vm0, %v354_v18 }
  0x4c   : > { %388 = vst.msk [vmem:[#allocation2 + $0xf1] sm:$0xff] %vm281_vm0, %v355_v19  ;;  %389 = vst.msk [vmem:[#allocation2 + $0xf9] sm:$0xff] %vm281_vm0, %v356_v20 }
  0x4d   : > { %390 = vst.msk [vmem:[#allocation2 + $0x109] sm:$0xff] %vm281_vm0, %v357_v21  ;;  %391 = vst.msk [vmem:[#allocation2 + $0x111] sm:$0xff] %vm281_vm0, %v358_v22 }
  0x4e   : > { %392 = vst.msk [vmem:[#allocation2 + $0x121] sm:$0xff] %vm281_vm0, %v359_v23  ;;  %393 = vst.msk [vmem:[#allocation2 + $0x129] sm:$0xff] %vm281_vm0, %v360_v24 }
  0x4f   : > { %394 = vst.msk [vmem:[#allocation2 + $0x139] sm:$0xff] %vm281_vm0, %v361_v25  ;;  %395 = vst.msk [vmem:[#allocation2 + $0x141] sm:$0xff] %vm281_vm0, %v362_v26 }
  0x50   : > { %396 = vst.msk [vmem:[#allocation2 + $0x151] sm:$0xff] %vm281_vm0, %v363_v27  ;;  %397 = vst.msk [vmem:[#allocation2 + $0x159] sm:$0xff] %vm281_vm0, %v364_v28 }
  0x51   : > { %398 = vst.msk [vmem:[#allocation2 + $0x169] sm:$0xff] %vm281_vm0, %v365_v29  ;;  %399 = vst.msk [vmem:[#allocation2 + $0x171] sm:$0xff] %vm281_vm0, %v366_v30 }
  0x52   : > { %400 = vst.msk [vmem:[#allocation2 + $0x181] sm:$0xff] %vm281_vm0, %v367_v31  ;;  %401 = vst.msk [vmem:[#allocation2 + $0x189] sm:$0xff] %vm281_vm0, %v368_v32 }
  0x53 PF: > { %v438_v33 = vld [vmem:[%s4668_s1 + $0x4] sm:$0xf]  ;;  %vm488_vm2 = vcmask 1043456   ;;  %v4045_v34 = vld [vmem:[%s4668_s1 + $0x10] sm:$0xf]  ;;  %s2708_s17 = smul.u32 192, %s3726_s25 }
  0x54   : > { %3125 = vmatprep.subr.msk.mxu1 %vm488_vm2, %v438_v33  ;;  %3229 = vmatprep.subr.msk.mxu0 %vm488_vm2, %v4045_v34  ;;  %vm439_vm3 = vcmask 31744   ;;  %v421_v35 = vld [vmem:[%s4668_s1] sm:$0xf]  ;;  %v1539_v36 = vld [vmem:[%s4668_s1 + $0x14] sm:$0xf]  ;;  %s4679_s15 = sshll.u32 %s3730_s26, 5 }
  0x55   : > { %3126 = vmatpush3.msk.msra.mxu1 %vm488_vm2, %v438_v33  ;;  %3230 = vmatpush3.msk.msra.mxu0 %vm488_vm2, %v4045_v34  ;;  %s4060_s14 = scalar_lea.vmem [#allocation2], %s2708_s17  ;;  %v1771_v42 = vld [vmem:[%s4668_s1 + $0x18] sm:$0xf]  ;;  %v4081_v43 = vld [vmem:[%s4668_s1 + $0x8] sm:$0xf]  ;;  %s2566_s17 = sshll.u32 %s3915_s28, 4  ;;  %s4554_s17 = int_to_ptr.vmem [resolvable:$true] %s2566_s17 }
  0x56   : > { %3151 = vmatprep.subr.msk.mxu1 %vm488_vm2, %v421_v35  ;;  %3255 = vmatprep.subr.msk.mxu0 %vm488_vm2, %v1539_v36  ;;  %v4144_v53 = vld [vmem:[%s4668_s1 + $0x1c] sm:$0xf]  ;;  %v1081_v6 = vld [vmem:[%s4668_s1 + $0xc] sm:$0xf]  ;;  %v2229_v20 = vld [vmem:[%s4668_s1 + $0x20] sm:$0xf] }
  0x57   : > { %s3745_s12 = smov [#allocation3]  }
  0x59   : > { %v422_v37 = vld [vmem:[%s4060_s14 + $0x1] sm:$0xff]  ;;  %v2795_v38 = vld [vmem:[%s4060_s14 + $0x19] sm:$0xff]  ;;  %v423_v39 = vld [vmem:[%s4060_s14 + $0x9] sm:$0xff] }
  0x5a   : > { %3127 = vmatprep.mubr.msk.f32.mxu1 %vm439_vm3, %v422_v37  ;;  %3231 = vmatprep.mubr.msk.f32.mxu0 %vm439_vm3, %v2795_v38  ;;  %v2796_v40 = vld [vmem:[%s4060_s14 + $0x21] sm:$0xff]  ;;  %v4071_v41 = vld [vmem:[%s4060_s14 + $0x31] sm:$0xff]  ;;  %v4086_v44 = vld [vmem:[%s4060_s14 + $0x39] sm:$0xff] }
  0x5b   : > { %3128 = vmatmul.mubr.msk.f32.vlgmr.msra.gmra.mrb[0].mxu1 %vm439_vm3, %v423_v39  ;;  %3232 = vmatmul.mubr.msk.f32.vlgmr.msra.gmra.mrb[0].mxu0 %vm439_vm3, %v2796_v40  ;;  %v4092_v45 = vld [vmem:[%s4060_s14 + $0x49] sm:$0xff]  ;;  %v4105_v46 = vld [vmem:[%s4060_s14 + $0x51] sm:$0xff]  ;;  %v4108_v47 = vld [vmem:[%s4060_s14 + $0x61] sm:$0xff] }
  0x5c   : > { %3152 = vmatpush3.msk.msra.mxu1 %vm488_vm2, %v421_v35  ;;  %3256 = vmatpush3.msk.msra.mxu0 %vm488_vm2, %v1539_v36  ;;  %v4119_v48 = vld [vmem:[%s4060_s14 + $0x69] sm:$0xff]  ;;  %v4122_v49 = vld [vmem:[%s4060_s14 + $0x1a] sm:$0xff]  ;;  %v4139_v52 = vld [vmem:[%s4060_s14 + $0x32] sm:$0xff] }
  0x5d   : > { %3130 = vmatprep.mubr.msk.f32.mxu1 %vm439_vm3, %v2795_v38  ;;  %3234 = vmatprep.mubr.msk.f32.mxu0 %vm439_vm3, %v4071_v41  ;;  %v4133_v50 = vld [vmem:[%s4060_s14 + $0x22] sm:$0xff]  ;;  %v4136_v51 = vld [vmem:[%s4060_s14 + $0x79] sm:$0xff]  ;;  %v4162_v56 = vld [vmem:[%s4060_s14 + $0x91] sm:$0xff] }
  0x5e   : > { %3281 = vmatprep.subr.msk.mxu0 %vm488_vm2, %v1771_v42  ;;  %3177 = vmatprep.subr.msk.mxu1 %vm488_vm2, %v4081_v43  ;;  %v4154_v54 = vld [vmem:[%s4060_s14 + $0x81] sm:$0xff]  ;;  %v4165_v57 = vld [vmem:[%s4060_s14 + $0x4a] sm:$0xff]  ;;  %v4178_v58 = vld [vmem:[%s4060_s14 + $0x99] sm:$0xff] }
  0x5f   : > { %3131 = vmatmul.mubr.msk.f32.gmra.mrb[2].mxu1 %vm439_vm3, %v2796_v40  ;;  %3235 = vmatmul.mubr.msk.f32.gmra.mrb[2].mxu0 %vm439_vm3, %v4086_v44  ;;  %v4157_v55 = vld [vmem:[%s4060_s14 + $0x3a] sm:$0xff]  ;;  %v4181_v59 = vld [vmem:[%s4060_s14 + $0x52] sm:$0xff]  ;;  %v4184_v60 = vld [vmem:[%s4060_s14 + $0xa9] sm:$0xff] }
  0x60   : > { %3133 = vmatprep.mubr.msk.f32.mxu1 %vm439_vm3, %v4071_v41  ;;  %3237 = vmatprep.mubr.msk.f32.mxu0 %vm439_vm3, %v4092_v45  ;;  %v4187_v61 = vld [vmem:[%s4060_s14 + $0x62] sm:$0xff]  ;;  %v4198_v62 = vld [vmem:[%s4060_s14 + $0xb1] sm:$0xff]  ;;  %v4205_v1 = vld [vmem:[%s4060_s14 + $0x7a] sm:$0xff] }
  0x61   : > { %v4201_v63 = vld [vmem:[%s4060_s14 + $0x6a] sm:$0xff]  ;;  %v405_v0 = vld [vmem:[%s4060_s14] sm:$0xff]  ;;  %v4219_v4 = vld [vmem:[%s4060_s14 + $0x18] sm:$0xff] }
  0x62   : > { %v406_v2 = vld [vmem:[%s4060_s14 + $0x8] sm:$0xff]  ;;  %v4222_v5 = vld [vmem:[%s4060_s14 + $0x92] sm:$0xff]  ;;  %v4235_v7 = vld [vmem:[%s4060_s14 + $0x20] sm:$0xff] }
  0x63   : > { %3134 = vmatmul.mubr.msk.f32.gmra.mrb[4].mxu1 %vm439_vm3, %v4086_v44  ;;  %3238 = vmatmul.mubr.msk.f32.gmra.mrb[4].mxu0 %vm439_vm3, %v4105_v46  ;;  %v4216_v3 = vld [vmem:[%s4060_s14 + $0x82] sm:$0xff]  ;;  %v4238_v8 = vld [vmem:[%s4060_s14 + $0x9a] sm:$0xff]  ;;  %v4243_v9 = vld [vmem:[%s4060_s14 + $0x30] sm:$0xff] }
  0x64   : > { %3136 = vmatprep.mubr.msk.f32.mxu1 %vm439_vm3, %v4092_v45  ;;  %3240 = vmatprep.mubr.msk.f32.mxu0 %vm439_vm3, %v4108_v47  ;;  %v4246_v10 = vld [vmem:[%s4060_s14 + $0xaa] sm:$0xff]  ;;  %v4258_v11 = vld [vmem:[%s4060_s14 + $0x38] sm:$0xff]  ;;  %v4267_v14 = vld [vmem:[%s4060_s14 + $0xc2] sm:$0xff] }
  0x65   : > { %v4261_v12 = vld [vmem:[%s4060_s14 + $0xb2] sm:$0xff]  ;;  %v4264_v13 = vld [vmem:[%s4060_s14 + $0x48] sm:$0xff]  ;;  %v4284_v17 = vld [vmem:[%s4060_s14 + $0x60] sm:$0xff] }
  0x66   : > { %v4278_v15 = vld [vmem:[%s4060_s14 + $0x50] sm:$0xff]  ;;  %v4295_v18 = vld [vmem:[%s4060_s14 + $0x68] sm:$0xff]  ;;  %v4298_v19 = vld [vmem:[%s4060_s14 + $0x78] sm:$0xff] }
  0x67   : > { %3137 = vmatmul.mubr.msk.f32.gmra.mrb[6].mxu1 %vm439_vm3, %v4105_v46  ;;  %3241 = vmatmul.mubr.msk.f32.gmra.mrb[6].mxu0 %vm439_vm3, %v4119_v48  ;;  %v4281_v16 = vld [vmem:[%s4060_s14 + $0xca] sm:$0xff]  ;;  %v4312_v21 = vld [vmem:[%s4060_s14 + $0x80] sm:$0xff]  ;;  %v4329_v23 = vld [vmem:[%s4060_s14 + $0x98] sm:$0xff] }
  0x68   : > { %3139 = vmatprep.mubr.msk.f32.mxu1 %vm439_vm3, %v4108_v47  ;;  %3257 = vmatprep.mubr.msk.f32.mxu0 %vm439_vm3, %v4122_v49  ;;  %v4317_v22 = vld [vmem:[%s4060_s14 + $0x90] sm:$0xff]  ;;  %v4332_v24 = vld [vmem:[%s4060_s14 + $0xa8] sm:$0xff]  ;;  %v4363_v28 = vld [vmem:[%s4060_s14 + $0xc0] sm:$0xff] }
  0x69   : > { %v4343_v25 = vld [vmem:[%s4060_s14 + $0xb0] sm:$0xff]  ;;  %v833_v26 = vld [vmem:[%s4060_s14 + $0x2] sm:$0xff]  ;;  %v2877_v30 = vld [vmem:[%s4060_s14 + $0xd8] sm:$0xff] }
  0x6a   : > { %v834_v27 = vld [vmem:[%s4060_s14 + $0xa] sm:$0xff]  ;;  %v2878_v31 = vld [vmem:[%s4060_s14 + $0xe0] sm:$0xff] }
  0x6b   : > { %3140 = vmatmul.mubr.msk.f32.gmra.mrb[8].mxu1 %vm439_vm3, %v4119_v48  ;;  %3258 = vmatmul.mubr.msk.f32.vlgmr.msra.gmra.mrb[0].mxu0 %vm439_vm3, %v4133_v50  ;;  %v2876_v29 = vld [vmem:[%s4060_s14 + $0xc8] sm:$0xff]  ;;  %v2943_v36 = vld [vmem:[%s4060_s14 + $0xda] sm:$0xff] }
  0x6c   : > { %3282 = vmatpush3.msk.msra.mxu0 %vm488_vm2, %v1771_v42  ;;  %3142 = vmatprep.mubr.msk.f32.mxu1 %vm439_vm3, %v4136_v51  ;;  %v2908_v32 = vld [vmem:[%s4060_s14 + $0xc1] sm:$0xff]  ;;  %v2909_v33 = vld [vmem:[%s4060_s14 + $0xc9] sm:$0xff] }
  0x6d   : > { %3260 = vmatprep.mubr.msk.f32.mxu0 %vm439_vm3, %v4139_v52  ;;  %3307 = vmatprep.subr.msk.mxu0 %vm488_vm2, %v4144_v53  ;;  %v2911_v35 = vld [vmem:[%s4060_s14 + $0xe1] sm:$0xff] }
  0x6e   : > { %v2944_v37 = vld [vmem:[%s4060_s14 + $0xe2] sm:$0xff] }
  0x6f   : > { %3143 = vmatmul.mubr.msk.f32.gmra.mrb[10].mxu1 %vm439_vm3, %v4154_v54  ;;  %3261 = vmatmul.mubr.msk.f32.gmra.mrb[2].mxu0 %vm439_vm3, %v4157_v55 }
  0x70   : > { %3145 = vmatprep.mubr.msk.f32.mxu1 %vm439_vm3, %v4162_v56  ;;  %3263 = vmatprep.mubr.msk.f32.mxu0 %vm439_vm3, %v4165_v57 }
  0x73   : > { %3146 = vmatmul.mubr.msk.f32.gmra.mrb[12].mxu1 %vm439_vm3, %v4178_v58  ;;  %3264 = vmatmul.mubr.msk.f32.gmra.mrb[4].mxu0 %vm439_vm3, %v4181_v59 }
  0x74   : > { %3148 = vmatprep.mubr.msk.f32.mxu1 %vm439_vm3, %v4184_v60  ;;  %3266 = vmatprep.mubr.msk.f32.mxu0 %vm439_vm3, %v4187_v61 }
  0x77   : > { %3149 = vmatmul.mubr.msk.f32.gmra.mrb[14].mxu1 %vm439_vm3, %v4198_v62  ;;  %3267 = vmatmul.mubr.msk.f32.gmra.mrb[6].mxu0 %vm439_vm3, %v4201_v63 }
  0x78   : > { %3153 = vmatprep.mubr.msk.f32.mxu1 %vm439_vm3, %v405_v0  ;;  %3269 = vmatprep.mubr.msk.f32.mxu0 %vm439_vm3, %v4205_v1 }
  0x7b   : > { %3154 = vmatmul.mubr.msk.f32.vlgmr.msra.gmra.mrb[0].mxu1 %vm439_vm3, %v406_v2  ;;  %3270 = vmatmul.mubr.msk.f32.gmra.mrb[8].mxu0 %vm439_vm3, %v4216_v3 }
  0x7c   : > { %3178 = vmatpush3.msk.msra.mxu1 %vm488_vm2, %v4081_v43  ;;  %3156 = vmatprep.mubr.msk.f32.mxu1 %vm439_vm3, %v4219_v4 }
  0x7d   : > { %3272 = vmatprep.mubr.msk.f32.mxu0 %vm439_vm3, %v4222_v5  ;;  %3203 = vmatprep.subr.msk.mxu1 %vm488_vm2, %v1081_v6 }
  0x7f   : > { %3157 = vmatmul.mubr.msk.f32.gmra.mrb[2].mxu1 %vm439_vm3, %v4235_v7  ;;  %3273 = vmatmul.mubr.msk.f32.gmra.mrb[10].mxu0 %vm439_vm3, %v4238_v8 }
  0x80   : > { %3159 = vmatprep.mubr.msk.f32.mxu1 %vm439_vm3, %v4243_v9  ;;  %3275 = vmatprep.mubr.msk.f32.mxu0 %vm439_vm3, %v4246_v10 }
  0x83   : > { %3160 = vmatmul.mubr.msk.f32.gmra.mrb[4].mxu1 %vm439_vm3, %v4258_v11  ;;  %3276 = vmatmul.mubr.msk.f32.gmra.mrb[12].mxu0 %vm439_vm3, %v4261_v12 }
  0x84   : > { %3162 = vmatprep.mubr.msk.f32.mxu1 %vm439_vm3, %v4264_v13  ;;  %3278 = vmatprep.mubr.msk.f32.mxu0 %vm439_vm3, %v4267_v14 }
  0x87   : > { %3163 = vmatmul.mubr.msk.f32.gmra.mrb[6].mxu1 %vm439_vm3, %v4278_v15  ;;  %3279 = vmatmul.mubr.msk.f32.gmra.mrb[14].mxu0 %vm439_vm3, %v4281_v16 }
  0x88   : > { %3165 = vmatprep.mubr.msk.f32.mxu1 %vm439_vm3, %v4284_v17  ;;  %3283 = vmatprep.mubr.msk.f32.mxu0 %vm439_vm3, %v4243_v9 }
  0x8b   : > { %3166 = vmatmul.mubr.msk.f32.gmra.mrb[8].mxu1 %vm439_vm3, %v4295_v18  ;;  %3284 = vmatmul.mubr.msk.f32.vlgmr.msra.gmra.mrb[0].mxu0 %vm439_vm3, %v4258_v11 }
  0x8c   : > { %3308 = vmatpush3.msk.msra.mxu0 %vm488_vm2, %v4144_v53  ;;  %3168 = vmatprep.mubr.msk.f32.mxu1 %vm439_vm3, %v4298_v19 }
  0x8d   : > { %3286 = vmatprep.mubr.msk.f32.mxu0 %vm439_vm3, %v4264_v13  ;;  %3333 = vmatprep.subr.msk.mxu0 %vm488_vm2, %v2229_v20 }
  0x8f   : > { %3169 = vmatmul.mubr.msk.f32.gmra.mrb[10].mxu1 %vm439_vm3, %v4312_v21  ;;  %3287 = vmatmul.mubr.msk.f32.gmra.mrb[2].mxu0 %vm439_vm3, %v4278_v15 }
  0x90   : > { %3171 = vmatprep.mubr.msk.f32.mxu1 %vm439_vm3, %v4317_v22  ;;  %3289 = vmatprep.mubr.msk.f32.mxu0 %vm439_vm3, %v4284_v17 }
  0x93   : > { %3172 = vmatmul.mubr.msk.f32.gmra.mrb[12].mxu1 %vm439_vm3, %v4329_v23  ;;  %3290 = vmatmul.mubr.msk.f32.gmra.mrb[4].mxu0 %vm439_vm3, %v4295_v18 }
  0x94   : > { %3174 = vmatprep.mubr.msk.f32.mxu1 %vm439_vm3, %v4332_v24  ;;  %3292 = vmatprep.mubr.msk.f32.mxu0 %vm439_vm3, %v4298_v19 }
  0x97   : > { %3175 = vmatmul.mubr.msk.f32.gmra.mrb[14].mxu1 %vm439_vm3, %v4343_v25  ;;  %3293 = vmatmul.mubr.msk.f32.gmra.mrb[6].mxu0 %vm439_vm3, %v4312_v21 }
  0x98   : > { %3179 = vmatprep.mubr.msk.f32.mxu1 %vm439_vm3, %v833_v26  ;;  %3295 = vmatprep.mubr.msk.f32.mxu0 %vm439_vm3, %v4317_v22 }
  0x9b   : > { %3180 = vmatmul.mubr.msk.f32.vlgmr.msra.gmra.mrb[0].mxu1 %vm439_vm3, %v834_v27  ;;  %3296 = vmatmul.mubr.msk.f32.gmra.mrb[8].mxu0 %vm439_vm3, %v4329_v23 }
  0x9c   : > { %3204 = vmatpush3.msk.msra.mxu1 %vm488_vm2, %v1081_v6  ;;  %3182 = vmatprep.mubr.msk.f32.mxu1 %vm439_vm3, %v4122_v49 }
  0x9d   : > { %3298 = vmatprep.mubr.msk.f32.mxu0 %vm439_vm3, %v4332_v24  ;;  %3359 = vmatprep.subr.msk.mxu1 %vm488_vm2, %v4045_v34 }
  0x9f   : > { %3183 = vmatmul.mubr.msk.f32.gmra.mrb[2].mxu1 %vm439_vm3, %v4133_v50  ;;  %3299 = vmatmul.mubr.msk.f32.gmra.mrb[10].mxu0 %vm439_vm3, %v4343_v25 }
  0xa0   : > { %3185 = vmatprep.mubr.msk.f32.mxu1 %vm439_vm3, %v4139_v52  ;;  %3301 = vmatprep.mubr.msk.f32.mxu0 %vm439_vm3, %v4363_v28 }
  0xa3   : > { %3186 = vmatmul.mubr.msk.f32.gmra.mrb[4].mxu1 %vm439_vm3, %v4157_v55  ;;  %3302 = vmatmul.mubr.msk.f32.gmra.mrb[12].mxu0 %vm439_vm3, %v2876_v29 }
  0xa4   : > { %3188 = vmatprep.mubr.msk.f32.mxu1 %vm439_vm3, %v4165_v57  ;;  %3304 = vmatprep.mubr.msk.f32.mxu0 %vm439_vm3, %v2877_v30 }
  0xa7   : > { %3189 = vmatmul.mubr.msk.f32.gmra.mrb[6].mxu1 %vm439_vm3, %v4181_v59  ;;  %3305 = vmatmul.mubr.msk.f32.gmra.mrb[14].mxu0 %vm439_vm3, %v2878_v31 }
  0xa8   : > { %3191 = vmatprep.mubr.msk.f32.mxu1 %vm439_vm3, %v4187_v61  ;;  %3309 = vmatprep.mubr.msk.f32.mxu0 %vm439_vm3, %v4071_v41 }
  0xab   : > { %3192 = vmatmul.mubr.msk.f32.gmra.mrb[8].mxu1 %vm439_vm3, %v4201_v63  ;;  %3310 = vmatmul.mubr.msk.f32.vlgmr.msra.gmra.mrb[0].mxu0 %vm439_vm3, %v4086_v44 }
  0xac   : > { %3334 = vmatpush3.msk.msra.mxu0 %vm488_vm2, %v2229_v20  ;;  %3194 = vmatprep.mubr.msk.f32.mxu1 %vm439_vm3, %v4205_v1 }
  0xad   : > { %3312 = vmatprep.mubr.msk.f32.mxu0 %vm439_vm3, %v4092_v45 }
  0xaf   : > { %3195 = vmatmul.mubr.msk.f32.gmra.mrb[10].mxu1 %vm439_vm3, %v4216_v3  ;;  %3313 = vmatmul.mubr.msk.f32.gmra.mrb[2].mxu0 %vm439_vm3, %v4105_v46 }
  0xb0   : > { %3197 = vmatprep.mubr.msk.f32.mxu1 %vm439_vm3, %v4222_v5  ;;  %3315 = vmatprep.mubr.msk.f32.mxu0 %vm439_vm3, %v4108_v47  ;;  %v4518_v47 = vld [vmem:[%s4669_s2] ss:$0 sm:$0xff] }
  0xb3   : > { %3198 = vmatmul.mubr.msk.f32.gmra.mrb[12].mxu1 %vm439_vm3, %v4238_v8  ;;  %3316 = vmatmul.mubr.msk.f32.gmra.mrb[4].mxu0 %vm439_vm3, %v4119_v48 }
  0xb4   : > { %3200 = vmatprep.mubr.msk.f32.mxu1 %vm439_vm3, %v4246_v10  ;;  %3318 = vmatprep.mubr.msk.f32.mxu0 %vm439_vm3, %v4136_v51 }
  0xb7   : > { %3201 = vmatmul.mubr.msk.f32.gmra.mrb[14].mxu1 %vm439_vm3, %v4261_v12  ;;  %3319 = vmatmul.mubr.msk.f32.gmra.mrb[6].mxu0 %vm439_vm3, %v4154_v54 }
  0xb8   : > { %3205 = vmatprep.mubr.msk.f32.mxu1 %vm439_vm3, %v4219_v4  ;;  %3321 = vmatprep.mubr.msk.f32.mxu0 %vm439_vm3, %v4162_v56 }
  0xbb   : > { %3206 = vmatmul.mubr.msk.f32.vlgmr.msra.gmra.mrb[0].mxu1 %vm439_vm3, %v4235_v7  ;;  %3322 = vmatmul.mubr.msk.f32.gmra.mrb[8].mxu0 %vm439_vm3, %v4178_v58 }
  0xbc   : > { %3360 = vmatpush3.msk.msra.mxu1 %vm488_vm2, %v4045_v34  ;;  %3208 = vmatprep.mubr.msk.f32.mxu1 %vm439_vm3, %v4243_v9  ;;  %v2910_v34 = vld [vmem:[%s4060_s14 + $0xd9] sm:$0xff]  ;;  %s2965_s14 = sshll.u32 %s3726_s25, 4 }
  0xbd   : > { %3324 = vmatprep.mubr.msk.f32.mxu0 %vm439_vm3, %v4184_v60  ;;  %s2563_s25 = sadd.s32 %s4679_s15, %s2965_s14  ;;  %s4566_s14 = scalar_lea.sflag [#allocation4], %s260_s11 }
  0xbe   : > { %s2967_s8 = sshll.u32 %s2563_s25, 7  ;;  %s3592_s25 = scalar_lea.vmem %s4554_s17, 2048 }
  0xbf   : > { %3209 = vmatmul.mubr.msk.f32.gmra.mrb[2].mxu1 %vm439_vm3, %v4258_v11  ;;  %3325 = vmatmul.mubr.msk.f32.gmra.mrb[10].mxu0 %vm439_vm3, %v4198_v62  ;;  %s4560_s10 = scalar_lea.hbm %s4672_s5, %s2967_s8  ;;  %p3593_p6 = scmp.ne.s32.totalorder %s4554_s17, %s3592_s25 }
  0xc0   : > { %3211 = vmatprep.mubr.msk.f32.mxu1 %vm439_vm3, %v4264_v13  ;;  %3327 = vmatprep.mubr.msk.f32.mxu0 %vm439_vm3, %v2908_v32  ;;  %s3596_s15 = sshll.u32 %s3745_s12, 4  ;;  %s3597_s15 = int_to_ptr.vmem [resolvable:$false] %s3596_s15 }
  0xc1   : > { %p3594_p8 = pnand %p3593_p6, %p3857_p3  ;;  %s3598_s18 = scalar_lea.vmem %s3597_s15, 4096 }
  0xc2   : > { %p3599_p10 = scmp.lt.s32.totalorder %s4554_s17, %s3597_s15  ;;  %p3600_p11 = scmp.lt.s32.totalorder %s3598_s18, %s3592_s25 }
  0xc3   : > { %3212 = vmatmul.mubr.msk.f32.gmra.mrb[4].mxu1 %vm439_vm3, %v4278_v15  ;;  %3328 = vmatmul.mubr.msk.f32.gmra.mrb[12].mxu0 %vm439_vm3, %v2909_v33  ;;  %p3595_p9 = pneg %p3594_p8 }
  0xc4   : > { %3214 = vmatprep.mubr.msk.f32.mxu1 %vm439_vm3, %v4284_v17  ;;  %3330 = vmatprep.mubr.msk.f32.mxu0 %vm439_vm3, %v2910_v34  ;;  %p3601_p0 = por %p3600_p11, %p3599_p10 }
  0xc6   : > { %p3602_p1 = pnand %p3601_p0, %p3595_p9 }
  0xc7   : > { %3215 = vmatmul.mubr.msk.f32.gmra.mrb[6].mxu1 %vm439_vm3, %v4295_v18  ;;  %3331 = vmatmul.mubr.msk.f32.gmra.mrb[14].mxu0 %vm439_vm3, %v2911_v35 }
  0xc8   : > { %3217 = vmatprep.mubr.msk.f32.mxu1 %vm439_vm3, %v4298_v19  ;;  %3335 = vmatprep.mubr.msk.f32.mxu0 %vm439_vm3, %v4139_v52 }
  0xcb   : > { %3218 = vmatmul.mubr.msk.f32.gmra.mrb[8].mxu1 %vm439_vm3, %v4312_v21  ;;  %3336 = vmatmul.mubr.msk.f32.vlgmr.msra.gmra.mrb[0].mxu0 %vm439_vm3, %v4157_v55 }
  0xcc   : > { %3220 = vmatprep.mubr.msk.f32.mxu1 %vm439_vm3, %v4317_v22  ;;  %3338 = vmatprep.mubr.msk.f32.mxu0 %vm439_vm3, %v4165_v57 }
  0xcf   : > { %3221 = vmatmul.mubr.msk.f32.gmra.mrb[10].mxu1 %vm439_vm3, %v4329_v23  ;;  %3339 = vmatmul.mubr.msk.f32.gmra.mrb[2].mxu0 %vm439_vm3, %v4181_v59 }
  0xd0   : > { %3223 = vmatprep.mubr.msk.f32.mxu1 %vm439_vm3, %v4332_v24  ;;  %3341 = vmatprep.mubr.msk.f32.mxu0 %vm439_vm3, %v4187_v61 }
  0xd3   : > { %3224 = vmatmul.mubr.msk.f32.gmra.mrb[12].mxu1 %vm439_vm3, %v4343_v25  ;;  %3342 = vmatmul.mubr.msk.f32.gmra.mrb[4].mxu0 %vm439_vm3, %v4201_v63 }
  0xd4   : > { %3226 = vmatprep.mubr.msk.f32.mxu1 %vm439_vm3, %v4363_v28  ;;  %3344 = vmatprep.mubr.msk.f32.mxu0 %vm439_vm3, %v4205_v1 }
  0xd7   : > { %3227 = vmatmul.mubr.msk.f32.gmra.mrb[14].mxu1 %vm439_vm3, %v2876_v29  ;;  %3345 = vmatmul.mubr.msk.f32.gmra.mrb[6].mxu0 %vm439_vm3, %v4216_v3 }
  0xd8   : > { %3243 = vmatprep.mubr.msk.f32.mxu1 %vm439_vm3, %v4136_v51  ;;  %3347 = vmatprep.mubr.msk.f32.mxu0 %vm439_vm3, %v4222_v5 }
  0xdb   : > { %3244 = vmatmul.mubr.msk.f32.vlgmr.msra.gmra.mrb[8].mxu1 %vm439_vm3, %v4154_v54  ;;  %3348 = vmatmul.mubr.msk.f32.gmra.mrb[8].mxu0 %vm439_vm3, %v4238_v8 }
  0xdc   : > { %3246 = vmatprep.mubr.msk.f32.mxu1 %vm439_vm3, %v4162_v56  ;;  %3350 = vmatprep.mubr.msk.f32.mxu0 %vm439_vm3, %v4246_v10 }
  0xdf   : > { %3247 = vmatmul.mubr.msk.f32.gmra.mrb[10].mxu1 %vm439_vm3, %v4178_v58  ;;  %3351 = vmatmul.mubr.msk.f32.gmra.mrb[10].mxu0 %vm439_vm3, %v4261_v12 }
  0xe0   : > { %3249 = vmatprep.mubr.msk.f32.mxu1 %vm439_vm3, %v4184_v60  ;;  %3353 = vmatprep.mubr.msk.f32.mxu0 %vm439_vm3, %v4267_v14 }
  0xe3   : > { %3250 = vmatmul.mubr.msk.f32.gmra.mrb[12].mxu1 %vm439_vm3, %v4198_v62  ;;  %3354 = vmatmul.mubr.msk.f32.gmra.mrb[12].mxu0 %vm439_vm3, %v4281_v16 }
  0xe4   : > { %3252 = vmatprep.mubr.msk.f32.mxu1 %vm439_vm3, %v2908_v32  ;;  %3356 = vmatprep.mubr.msk.f32.mxu0 %vm439_vm3, %v2943_v36 }
  0xe7   : > { %3253 = vmatmul.mubr.msk.f32.gmra.mrb[14].mxu1 %vm439_vm3, %v2909_v33  ;;  %3357 = vmatmul.mubr.msk.f32.gmra.mrb[14].mxu0 %vm439_vm3, %v2944_v37 }
 0x18e   : > { %v3207_v38 = vpop.f32.mrb[0].mxu1 }
 0x18f   : > { %v1199_v39 = vpop.f32.mrb[1].mxu1 }
 0x192   : > { %v3210_v40 = vpop.f32.mrb[2].mxu1 }
 0x193   : > { %v1209_v41 = vpop.f32.mrb[3].mxu1 }
 0x196   : > { %v3213_v42 = vpop.f32.mrb[4].mxu1 }
 0x197   : > { %v1219_v43 = vpop.f32.mrb[5].mxu1 }
 0x19a   : > { %v3216_v44 = vpop.f32.mrb[6].mxu1 }
 0x19b   : > { %v1229_v45 = vpop.f32.mrb[7].mxu1 }
 0x19e   : > { %v3337_v46 = vpop.f32.mrb[0].mxu0 }
 0x19f   : > { %v3361_v48 = vadd.f32 %v3337_v46, %v3207_v38  ;;  %v2347_v49 = vpop.f32.mrb[1].mxu0 }
 0x1a0   : > { %v3362_v50 = vadd.f32 %v2347_v49, %v1199_v39 }
 0x1a1   : > { %v2450_v51 = vadd.f32 %v3361_v48, %v4518_v47 }
 0x1a2   : > { %v2449_v52 = vadd.f32 %v3362_v50, %v4518_v47  ;;  %v3340_v53 = vpop.f32.mrb[2].mxu0 }
 0x1a3   : > { %v2491_v54 = vmul.f32 %v2450_v51, %v2450_v51  ;;  %2530 = vst [vmem:[%s3915_s28 + $0x8] sm:$0xff] %v2450_v51  ;;  %v3363_v55 = vadd.f32 %v3340_v53, %v3210_v40  ;;  %v2357_v56 = vpop.f32.mrb[3].mxu0 }
 0x1a4   : > { %v2466_v57 = vadd.f32 %v2450_v51, %v2449_v52  ;;  %v2490_v58 = vmul.f32 %v2449_v52, %v2449_v52  ;;  %2529 = vst [vmem:[%s3915_s28] sm:$0xff] %v2449_v52  ;;  %v3364_v59 = vadd.f32 %v2357_v56, %v1209_v41 }
 0x1a5   : > { %v2452_v60 = vadd.f32 %v3363_v55, %v4518_v47 }
 0x1a6   : > { %v2506_v61 = vadd.f32 %v2491_v54, %v2490_v58  ;;  %v2451_v62 = vadd.f32 %v3364_v59, %v4518_v47  ;;  %v3343_v63 = vpop.f32.mrb[4].mxu0 }
 0x1a7   : > { %2532 = vst [vmem:[%s3915_s28 + $0x18] sm:$0xff] %v2452_v60  ;;  %v3365_v0 = vadd.f32 %v3343_v63, %v3213_v42  ;;  %v2367_v1 = vpop.f32.mrb[5].mxu0  ;;  %v2493_v6 = vmul.f32 %v2452_v60, %v2452_v60 }
 0x1a8   : > { %v2467_v2 = vadd.f32 %v2466_v57, %v2451_v62  ;;  %v2492_v3 = vmul.f32 %v2451_v62, %v2451_v62  ;;  %2531 = vst [vmem:[%s3915_s28 + $0x10] sm:$0xff] %v2451_v62  ;;  %v3366_v4 = vadd.f32 %v2367_v1, %v1219_v43 }
 0x1a9   : > { %v2454_v5 = vadd.f32 %v3365_v0, %v4518_v47 }
 0x1aa   : > { %v2507_v7 = vadd.f32 %v2506_v61, %v2492_v3  ;;  %v2453_v8 = vadd.f32 %v3366_v4, %v4518_v47  ;;  %v2468_v9 = vadd.f32 %v2467_v2, %v2452_v60  ;;  %v3346_v10 = vpop.f32.mrb[6].mxu0 }
 0x1ab   : > { %2534 = vst [vmem:[%s3915_s28 + $0x28] sm:$0xff] %v2454_v5  ;;  %v3367_v11 = vadd.f32 %v3346_v10, %v3216_v44  ;;  %v2377_v12 = vpop.f32.mrb[7].mxu0  ;;  %v2495_v18 = vmul.f32 %v2454_v5, %v2454_v5 }
 0x1ac   : > { %v2469_v13 = vadd.f32 %v2468_v9, %v2453_v8  ;;  %v2494_v14 = vmul.f32 %v2453_v8, %v2453_v8  ;;  %v2508_v15 = vadd.f32 %v2507_v7, %v2493_v6  ;;  %2533 = vst [vmem:[%s3915_s28 + $0x20] sm:$0xff] %v2453_v8  ;;  %v3368_v16 = vadd.f32 %v2377_v12, %v1229_v45 }
 0x1ad   : > { %v2456_v17 = vadd.f32 %v3367_v11, %v4518_v47 }
 0x1ae   : > { %v2509_v19 = vadd.f32 %v2508_v15, %v2494_v14  ;;  %v2455_v20 = vadd.f32 %v3368_v16, %v4518_v47  ;;  %v2470_v21 = vadd.f32 %v2469_v13, %v2454_v5  ;;  %v3245_v22 = vpop.f32.mrb[8].mxu1  ;;  %v3349_v23 = vpop.f32.mrb[8].mxu0 }
 0x1af   : > { %2536 = vst [vmem:[%s3915_s28 + $0x38] sm:$0xff] %v2456_v17  ;;  %v3369_v24 = vadd.f32 %v3349_v23, %v3245_v22  ;;  %v1468_v25 = vpop.f32.mrb[9].mxu1  ;;  %v2387_v26 = vpop.f32.mrb[9].mxu0  ;;  %v2497_v32 = vmul.f32 %v2456_v17, %v2456_v17 }
 0x1b0   : > { %v2471_v27 = vadd.f32 %v2470_v21, %v2455_v20  ;;  %v2496_v28 = vmul.f32 %v2455_v20, %v2455_v20  ;;  %v2510_v29 = vadd.f32 %v2509_v19, %v2495_v18  ;;  %2535 = vst [vmem:[%s3915_s28 + $0x30] sm:$0xff] %v2455_v20  ;;  %v3370_v30 = vadd.f32 %v2387_v26, %v1468_v25 }
 0x1b1   : > { %v2458_v31 = vadd.f32 %v3369_v24, %v4518_v47 }
 0x1b2   : > { %v2511_v33 = vadd.f32 %v2510_v29, %v2496_v28  ;;  %v2457_v34 = vadd.f32 %v3370_v30, %v4518_v47  ;;  %v2472_v35 = vadd.f32 %v2471_v27, %v2456_v17  ;;  %v3248_v36 = vpop.f32.mrb[10].mxu1  ;;  %v3352_v37 = vpop.f32.mrb[10].mxu0 }
 0x1b3   : > { %2538 = vst [vmem:[%s3915_s28 + $0x48] sm:$0xff] %v2458_v31  ;;  %v3371_v38 = vadd.f32 %v3352_v37, %v3248_v36  ;;  %v1478_v39 = vpop.f32.mrb[11].mxu1  ;;  %v2397_v40 = vpop.f32.mrb[11].mxu0  ;;  %v2499_v46 = vmul.f32 %v2458_v31, %v2458_v31 }
 0x1b4   : > { %v2473_v41 = vadd.f32 %v2472_v35, %v2457_v34  ;;  %v2498_v42 = vmul.f32 %v2457_v34, %v2457_v34  ;;  %v2512_v43 = vadd.f32 %v2511_v33, %v2497_v32  ;;  %2537 = vst [vmem:[%s3915_s28 + $0x40] sm:$0xff] %v2457_v34  ;;  %v3372_v44 = vadd.f32 %v2397_v40, %v1478_v39 }
 0x1b5   : > { %v2460_v45 = vadd.f32 %v3371_v38, %v4518_v47 }
 0x1b6   : > { %v2513_v48 = vadd.f32 %v2512_v43, %v2498_v42  ;;  %v2459_v49 = vadd.f32 %v3372_v44, %v4518_v47  ;;  %v2474_v50 = vadd.f32 %v2473_v41, %v2458_v31  ;;  %v3251_v51 = vpop.f32.mrb[12].mxu1  ;;  %v3355_v52 = vpop.f32.mrb[12].mxu0 }
 0x1b7   : > { %2540 = vst [vmem:[%s3915_s28 + $0x58] sm:$0xff] %v2460_v45  ;;  %v3373_v53 = vadd.f32 %v3355_v52, %v3251_v51  ;;  %v1488_v54 = vpop.f32.mrb[13].mxu1  ;;  %v2407_v55 = vpop.f32.mrb[13].mxu0  ;;  %v2501_v61 = vmul.f32 %v2460_v45, %v2460_v45 }
 0x1b8   : > { %v2475_v56 = vadd.f32 %v2474_v50, %v2459_v49  ;;  %v2500_v57 = vmul.f32 %v2459_v49, %v2459_v49  ;;  %v2514_v58 = vadd.f32 %v2513_v48, %v2499_v46  ;;  %2539 = vst [vmem:[%s3915_s28 + $0x50] sm:$0xff] %v2459_v49  ;;  %v3374_v59 = vadd.f32 %v2407_v55, %v1488_v54 }
 0x1b9   : > { %v2462_v60 = vadd.f32 %v3373_v53, %v4518_v47 }
 0x1ba   : > { %v2515_v62 = vadd.f32 %v2514_v58, %v2500_v57  ;;  %v2461_v63 = vadd.f32 %v3374_v59, %v4518_v47  ;;  %v2476_v0 = vadd.f32 %v2475_v56, %v2460_v45  ;;  %v3254_v1 = vpop.f32.mrb[14].mxu1  ;;  %v3358_v2 = vpop.f32.mrb[14].mxu0 }
 0x1bb   : > { %2542 = vst [vmem:[%s3915_s28 + $0x68] sm:$0xff] %v2462_v60  ;;  %v3375_v3 = vadd.f32 %v3358_v2, %v3254_v1  ;;  %v1498_v4 = vpop.f32.mrb[15].mxu1  ;;  %v2417_v5 = vpop.f32.mrb[15].mxu0  ;;  %v2503_v11 = vmul.f32 %v2462_v60, %v2462_v60 }
 0x1bc   : > { %v2477_v6 = vadd.f32 %v2476_v0, %v2461_v63  ;;  %v2502_v7 = vmul.f32 %v2461_v63, %v2461_v63  ;;  %v2516_v8 = vadd.f32 %v2515_v62, %v2501_v61  ;;  %2541 = vst [vmem:[%s3915_s28 + $0x60] sm:$0xff] %v2461_v63  ;;  %v3376_v9 = vadd.f32 %v2417_v5, %v1498_v4 }
 0x1bd   : > { %v2464_v10 = vadd.f32 %v3375_v3, %v4518_v47 }
 0x1be   : > { %v2517_v12 = vadd.f32 %v2516_v8, %v2502_v7  ;;  %v2463_v13 = vadd.f32 %v3376_v9, %v4518_v47  ;;  %v2478_v14 = vadd.f32 %v2477_v6, %v2462_v60 }
 0x1bf   : > { %2544 = vst [vmem:[%s3915_s28 + $0x78] sm:$0xff] %v2464_v10 }
 0x1c0   : > { %v2479_v15 = vadd.f32 %v2478_v14, %v2463_v13  ;;  %v2504_v16 = vmul.f32 %v2463_v13, %v2463_v13  ;;  %v2518_v17 = vadd.f32 %v2517_v12, %v2503_v11  ;;  %2543 = vst [vmem:[%s3915_s28 + $0x70] sm:$0xff] %v2463_v13 }
 0x1c1   : > { %3605 = shalt.err (!%p3602_p1)
}
 0x1c2   : > { %s3606_s28 = scalar_lea.hbm %s4560_s10, 2048  ;;  %s3610_s12 = scalar_lea.hbm %s4672_s5, 8192 }
 0x1c3   : > { %p3607_p4 = scmp.ne.s32.totalorder %s4560_s10, %s3606_s28  ;;  %p3611_p6 = scmp.lt.u32.totalorder %s4560_s10, %s4672_s5 }
 0x1c4   : > { %p3612_p8 = scmp.lt.u32.totalorder %s3610_s12, %s3606_s28  ;;  %p3614_p10 = scmp.lt.u32.totalorder %s3606_s28, %s4560_s10 }
 0x1c5   : > { %p3608_p2 = pnand %p3607_p4, %p3857_p3 }
 0x1c6   : > { %p3613_p9 = por %p3612_p8, %p3611_p6 }
 0x1c7   : > { %p3609_p5 = pneg %p3608_p2 }
 0x1c8   : > { %p3615_p11 = por %p3614_p10, %p3613_p9 }
 0x1ca   : > { %p3616_p0 = pnand %p3615_p11, %p3609_p5 }
 0x1cc   : > { %3619 = shalt.err (!%p3616_p0)
}
 0x1cd   : > { %s3746_s25 = smov 128   ;;  %s3747_s18 = smov 8   ;;  %v2505_v47 = vmul.f32 %v2464_v10, %v2464_v10  ;;  %v2480_v18 = vadd.f32 %v2479_v15, %v2464_v10  ;;  %v2519_v19 = vadd.f32 %v2518_v17, %v2504_v16  ;;  %v2465_v30 = vld [vmem:[%s3917_s27] sm:$0x1]  ;;  %v2489_v33 = vld [vmem:[%s3917_s27 + $0x1] sm:$0x1] }
 0x1ce   : > { %3489 = dma.vmem_to_hbm [thread:$0]  (%p3857_p3), %s4554_s17, 2048, %s4560_s10, %s4566_s14, %s3746_s25, %s3746_s25, %s3747_s18  }
 0x1cf   : > { %v2481_v20 = vrot.slane %v2480_v18, 4  ;;  %v2520_v21 = vadd.f32 %v2519_v19, %v2505_v47  ;;  %s2582_s13 = sshll.u32 %s3917_s27, 4  ;;  %s4690_s17 = sshll.u32 %s3730_s26, 5  ;;  %s4601_s13 = int_to_ptr.vmem [resolvable:$true] %s2582_s13 }
 0x1d0   : > { %s4599_s28 = scalar_lea.hbm %s4673_s6, %s4690_s17  ;;  %s4691_s11 = sand.u32 1, %s3706_s22  }
 0x1d1   : > { %v2482_v22 = vadd.f32 %v2481_v20, %v2480_v18  ;;  %v2521_v23 = vrot.slane %v2520_v21, 4  ;;  %s2551_s8 = scalar_lea.sflag [#allocation6], %s4691_s11  ;;  %s3620_s12 = scalar_lea.vmem %s4601_s13, 32 }
 0x1d2   : > { %p3621_p3 = scmp.ne.s32.totalorder %s4601_s13, %s3620_s12  ;;  %s3748_s9 = smov [#allocation5]  }
 0x1d3   : > { %v2483_v24 = vrot.slane %v2482_v22, 2  ;;  %v2522_v25 = vadd.f32 %v2521_v23, %v2520_v21  ;;  %s3624_s26 = sshll.u32 %s3748_s9, 4  ;;  %s3625_s26 = int_to_ptr.vmem [resolvable:$false] %s3624_s26 }
 0x1d4   : > { %p3622_p1 = pnand %p3621_p3, %p3884_p12  ;;  %s3626_s15 = scalar_lea.vmem %s3625_s26, 64 }
 0x1d5   : > { %v2484_v26 = vadd.f32 %v2483_v24, %v2482_v22  ;;  %v2523_v27 = vrot.slane %v2522_v25, 2  ;;  %p3627_p2 = scmp.lt.s32.totalorder %s4601_s13, %s3625_s26  ;;  %p3628_p5 = scmp.lt.s32.totalorder %s3626_s15, %s3620_s12 }
 0x1d6   : > { %p3623_p4 = pneg %p3622_p1 }
 0x1d7   : > { %v2485_v28 = vrot.slane %v2484_v26, 1  ;;  %v2524_v29 = vadd.f32 %v2523_v27, %v2522_v25  ;;  %p3629_p6 = por %p3628_p5, %p3627_p2 }
 0x1d9   : > { %v2486_v31 = vadd.f32 %v2485_v28, %v2484_v26  ;;  %v2525_v32 = vrot.slane %v2524_v29, 1  ;;  %p3630_p8 = pnand %p3629_p6, %p3623_p4 }
 0x1db   : > { %v2487_v34 = vadd.f32 %v2486_v31, %v2465_v30  ;;  %v2526_v35 = vadd.f32 %v2525_v32, %v2524_v29 }
 0x1dd   : > { %2488 = vst [vmem:[%s3917_s27] sm:$0x1] %v2487_v34  ;;  %v2527_v36 = vadd.f32 %v2526_v35, %v2489_v33 }
 0x1df   : > { %2528 = vst [vmem:[%s3917_s27 + $0x1] sm:$0x1] %v2527_v36 }
 0x1e0   : > { %3633 = shalt.err (!%p3630_p8)
}
 0x1e1   : > { %s3634_s27 = scalar_lea.hbm %s4599_s28, 32  ;;  %s3638_s17 = scalar_lea.hbm %s4673_s6, 64 }
 0x1e2   : > { %p3635_p9 = scmp.ne.s32.totalorder %s4599_s28, %s3634_s27  ;;  %p3639_p0 = scmp.lt.u32.totalorder %s4599_s28, %s4673_s6 }
 0x1e3   : > { %p3640_p3 = scmp.lt.u32.totalorder %s3638_s17, %s3634_s27  ;;  %p3642_p4 = scmp.lt.u32.totalorder %s3634_s27, %s4599_s28 }
 0x1e4   : > { %p3636_p10 = pnand %p3635_p9, %p3884_p12 }
 0x1e5   : > { %p3641_p1 = por %p3640_p3, %p3639_p0 }
 0x1e6   : > { %p3637_p11 = pneg %p3636_p10 }
 0x1e7   : > { %p3643_p2 = por %p3642_p4, %p3641_p1 }
 0x1e9   : > { %p3644_p5 = pnand %p3643_p2, %p3637_p11 }
 0x1eb   : > { %3647 = shalt.err (!%p3644_p5)
}
 0x1ec   : > { %3490 = dma.vmem_to_hbm [thread:$0]  (%p3884_p12), %s4601_s13, 32, %s4599_s28, %s2551_s8  }
 0x1ed PF: > { %p3500_p6 = scmp.ge.s32.totalorder %s3742_s29, 2  ;;  %s2594_s11 = sand.u32 1, %s3714_s3  }
 0x1ee   : > { %s2595_s12 = scalar_lea.sflag [#allocation4], %s2594_s11 }
 0x1ef   : > { %p3494_p8 = pnand %p3500_p6, %p3872_p7 }
 0x1f1   : > { %3693 = dma.done.wait (!%p3494_p8), %s2595_s12, 2048  }
 0x1f2   : > { %3695 = vsyncadd (!%p3494_p8), %s2595_s12, 4294965248  ;;  %s2603_s9 = sand.u32 1, %s3702_s21   ;;  %p3497_p9 = pnand %p3500_p6, %p3896_p13 }
 0x1f3   : > { %s2604_s19 = scalar_lea.sflag [#allocation6], %s2603_s9 }
 0x1f4   : > { %3697 = dma.done.wait (!%p3497_p9), %s2604_s19, 32  }
 0x1f5   : > { %3699 = vsyncadd (!%p3497_p9), %s2604_s19, 4294967264  ;;  %s23_s29 = sadd.s32 1, %s3742_s29   ;;  %s4692_s25 = sld [smem:[#allocation9_spill]] }
 0x1f6   : > { %p20_p12 = scmp.ge.s32.totalorder %s23_s29, 6   ;;  %s4693_s26 = sld [smem:[#allocation10_spill]] }
 0x1f7   : > { %s4694_s27 = sld [smem:[#allocation11_spill]]  ;;  %s4695_s28 = sld [smem:[#allocation12_spill]] }
 0x1f8   : > { %s4696_s21 = smov %s3706_s22  ;;  %s4697_s22 = smov %s3710_s23 }
 0x1f9   : > { %s4698_s23 = smov %s3889_s20  ;;  %s4699_s3 = smov %s3718_s24 }
 0x1fa   : > { %s4700_s24 = smov %s3722_s4  ;;  %s4701_s4 = smov %s3892_s30 }
 0x1fb   :  { %22 = sbr.rel (!%p20_p12) target bundleno = 9 (0x9), region = 100 }
 0x202   :  { %2609 = vsyncpa [#allocation4], 1 }
 0x203   :  { %2611 = vsyncpa [#allocation4 + $0x1], 1 }
 0x204   :  { %2612 = vsyncpa [#allocation6], 1 }
 0x205   :  { %2614 = vsyncpa [#allocation6 + $0x1], 1 }

</bundles_post_ra>
